<compile_context>
chip_gen: v7x
topology: tpu7x:2x2x1
jax: 0.10.0
libtpu: 0.0.40
codegen_flags: <defaults>
</compile_context>

<pallas_src>
import functools

import jax
import jax.numpy as jnp
from jax.experimental import pallas as pl
from jax.experimental.pallas import tpu as pltpu

_MIB = 1024 * 1024


def _round_up(x, m):
    return ((x + m - 1) // m) * m


def _choose_tm(M, tile_m):
    """Pick an M-tile: multiple of 16 (bf16 packing), >=2 grid steps if possible."""
    tm = min(tile_m, _round_up(M, 16))
    # Prefer >= 2 steps on the parallel M axis so both v7x TensorCores get work.
    while pl.cdiv(M, tm) < 2 and tm >= 32:
        tm = _round_up(tm // 2, 16)
    if pl.cdiv(M, tm) < 2 and M > 8:
        tm = max(8, _round_up((M + 1) // 2, 8))
    return tm


def _ffn_fused_kernel(x_ref, w1_ref, b1_ref, w2_ref, b2_ref, o_ref):
    # x_ref: (tm, C) f32   w1_ref: (C, H) bf16   b1_ref: (1, H) f32
    # w2_ref: (H, C) bf16  b2_ref: (1, C) f32    o_ref: (tm, C) f32
    x_bf = x_ref[...].astype(jnp.bfloat16)
    hid = jnp.dot(x_bf, w1_ref[...], preferred_element_type=jnp.float32)
    hid = jnp.maximum(hid + b1_ref[...], 0.0)
    out = jnp.dot(hid.astype(jnp.bfloat16), w2_ref[...],
                  preferred_element_type=jnp.float32)
    # Dropout (eval mode) = identity.
    o_ref[...] = (out + b2_ref[...]).astype(o_ref.dtype)


def _ffn_blocked_kernel(x_ref, w1_ref, b1_ref, w2_ref, b2_ref, o_ref):
    # H-blocked fallback: accumulate partial products directly into the
    # VMEM-resident f32 output block (no separate scratch accumulator).
    h_idx = pl.program_id(1)

    @pl.when(h_idx == 0)
    def _():
        o_ref[...] = jnp.zeros_like(o_ref)

    x_bf = x_ref[...].astype(jnp.bfloat16)
    hid = jnp.dot(x_bf, w1_ref[...], preferred_element_type=jnp.float32)
    hid = jnp.maximum(hid + b1_ref[...], 0.0)
    o_ref[...] += jnp.dot(hid.astype(jnp.bfloat16), w2_ref[...],
                          preferred_element_type=jnp.float32)

    @pl.when(h_idx == pl.num_programs(1) - 1)
    def _():
        # Dropout (eval mode) = identity.
        o_ref[...] = o_ref[...] + b2_ref[...]


@functools.partial(
    jax.jit, static_argnames=("tile_m", "tile_h", "max_fused_vmem_bytes"))
def feed_forward(x, w1, b1, w2, b2, *, tile_m=512, tile_h=512,
                 max_fused_vmem_bytes=24 * _MIB):
    """x: [B, T, C]. Returns [B, T, C] (eval-mode dropout = identity).

    Weights should be kept in bf16 at rest by the caller (cast once at load
    time); the in-wrapper astype is then a no-op.
    """
    B, T, C = x.shape
    H = w1.shape[1]
    M = B * T

    assert C % 128 == 0, "C must be a multiple of 128 (lane-dense blocks)"
    assert H % 128 == 0, "hidden dim must be a multiple of 128"

    tm = _choose_tm(M, tile_m)
    M_pad = _round_up(M, tm)
    grid_m = M_pad // tm

    x2d = x.reshape(M, C).astype(jnp.float32)
    if M_pad != M:
        x2d = jnp.pad(x2d, ((0, M_pad - M), (0, 0)))

    w1_bf = w1.astype(jnp.bfloat16)   # no-op if already bf16 at rest
    w2_bf = w2.astype(jnp.bfloat16)
    b1_2d = b1.reshape(1, H).astype(jnp.float32)
    b2_2d = b2.reshape(1, C).astype(jnp.float32)

    # Estimated VMEM footprint of the single-pass (H unblocked) schedule:
    # double-buffered f32 x/out tiles + (conservatively 2x) bf16 weights +
    # the (tm, H) f32 hidden temp and its bf16 cast + biases.
    fused_bytes = (2 * 2 * tm * C * 4          # x + out tiles, double buffered
                   + 2 * 2 * C * H * 2         # W1 + W2 bf16, 2 buffers each
                   + tm * H * 6                # hid f32 + bf16 cast
                   + 2 * (H + C) * 4)          # biases
    use_fused = fused_bytes <= max_fused_vmem_bytes

    if use_fused:
        grid = (grid_m,)
        in_specs = [
            pl.BlockSpec((tm, C), lambda i: (i, 0)),   # x rows
            pl.BlockSpec((C, H), lambda i: (0, 0)),    # W1 (VMEM-resident)
            pl.BlockSpec((1, H), lambda i: (0, 0)),    # b1
            pl.BlockSpec((H, C), lambda i: (0, 0)),    # W2 (VMEM-resident)
            pl.BlockSpec((1, C), lambda i: (0, 0)),    # b2
        ]
        out_specs = pl.BlockSpec((tm, C), lambda i: (i, 0))
        kernel = _ffn_fused_kernel
        dim_sem = ("parallel",)
        weight_hbm_bytes = 2 * C * H * 2               # fetched once total
        vmem_needed = fused_bytes
    else:
        th = min(tile_h, H)
        assert H % th == 0, "H must be divisible by tile_h"
        grid = (grid_m, H // th)
        in_specs = [
            pl.BlockSpec((tm, C), lambda i, h: (i, 0)),   # x rows (resident over h)
            pl.BlockSpec((C, th), lambda i, h: (0, h)),   # W1 H-block
            pl.BlockSpec((1, th), lambda i, h: (0, h)),   # b1 H-block
            pl.BlockSpec((th, C), lambda i, h: (h, 0)),   # W2 H-block
            pl.BlockSpec((1, C), lambda i, h: (0, 0)),    # b2
        ]
        out_specs = pl.BlockSpec((tm, C), lambda i, h: (i, 0))
        kernel = _ffn_blocked_kernel
        dim_sem = ("parallel", "arbitrary")
        # With h innermost, both weight matrices stream once per M tile.
        weight_hbm_bytes = grid_m * 2 * C * H * 2
        vmem_needed = (2 * 2 * tm * C * 4
                       + 2 * 2 * 2 * C * th * 2
                       + tm * th * 6
                       + 2 * (th + C) * 4)

    # Headroom for Mosaic internal scratch; cap below v7x's 64 MiB physical.
    vmem_limit = int(min(max(vmem_needed + 8 * _MIB, 32 * _MIB), 48 * _MIB))

    cost = pl.CostEstimate(
        flops=2 * M_pad * C * H * 2,             # two matmuls
        transcendentals=0,
        bytes_accessed=(M_pad * C * 4            # x (f32)
                        + weight_hbm_bytes       # W1 + W2 per actual schedule
                        + (H + C) * 4            # biases
                        + M_pad * C * 4),        # output (f32)
    )

    out2d = pl.pallas_call(
        kernel,
        out_shape=jax.ShapeDtypeStruct((M_pad, C), jnp.float32),
        grid_spec=pltpu.PrefetchScalarGridSpec(
            num_scalar_prefetch=0,
            grid=grid,
            in_specs=in_specs,
            out_specs=out_specs,
        ),
        compiler_params=pltpu.CompilerParams(
            dimension_semantics=dim_sem,
            vmem_limit_bytes=vmem_limit,
        ),
        cost_estimate=cost,
    )(x2d, w1_bf, b1_2d, w2_bf, b2_2d)

    return out2d[:M].reshape(B, T, C).astype(x.dtype)


def _reference(x, w1, b1, w2, b2):
    h = jnp.maximum(x @ w1 + b1, 0.0)
    return h @ w2 + b2


if __name__ == "__main__":
    # Shapes consistent with the module: C = n_embid = 384, hidden = 4*C.
    B, T, n_embid = 2, 8, 384
    hidden = 4 * n_embid

    key = jax.random.PRNGKey(0)
    kx, k1, k2, k3, k4 = jax.random.split(key, 5)

    x = jax.random.normal(kx, (B, T, n_embid), dtype=jnp.float32)

    # Deterministic parameter init (uniform, roughly like nn.Linear default).
    lim1 = 1.0 / jnp.sqrt(n_embid)
    lim2 = 1.0 / jnp.sqrt(hidden)
    w1 = jax.random.uniform(k1, (n_embid, hidden), jnp.float32, -lim1, lim1)
    b1 = jax.random.uniform(k2, (hidden,), jnp.float32, -lim1, lim1)
    w2 = jax.random.uniform(k3, (hidden, n_embid), jnp.float32, -lim2, lim2)
    b2 = jax.random.uniform(k4, (n_embid,), jnp.float32, -lim2, lim2)

    # Keep weights bf16 "at rest": cast once here, not inside the hot path.
    w1_bf = w1.astype(jnp.bfloat16)
    w2_bf = w2.astype(jnp.bfloat16)

    ref = _reference(x, w1, b1, w2, b2)

    # Primary path: fused (H unblocked, weights VMEM-resident).
    out = feed_forward(x, w1_bf, b1, w2_bf, b2)
    jax.block_until_ready(out)
    assert out.shape == (B, T, n_embid)
    # bf16 MXU operands with f32 accumulation -> loosened tolerance vs f32 ref.
    assert jnp.allclose(out, ref, atol=5e-2, rtol=5e-2), (
        float(jnp.max(jnp.abs(out - ref))))

    # Fallback path: H-blocked with accumulation into the resident output.
    out_blk = feed_forward(x, w1_bf, b1, w2_bf, b2, max_fused_vmem_bytes=0)
    jax.block_until_ready(out_blk)
    assert jnp.allclose(out_blk, ref, atol=5e-2, rtol=5e-2), (
        float(jnp.max(jnp.abs(out_blk - ref))))

    print("KERNEL_OK")
</pallas_src>

<mosaic_0001>
module attributes {stable_mosaic.version = 11 : i64} {
  func.func @_ffn_fused_kernel(%arg0: i32, %arg1: memref<8x384xf32, #tpu.memory_space<vmem>>, %arg2: memref<384x1536xbf16, #tpu.memory_space<vmem>>, %arg3: memref<1x1536xf32, #tpu.memory_space<vmem>>, %arg4: memref<1536x384xbf16, #tpu.memory_space<vmem>>, %arg5: memref<1x384xf32, #tpu.memory_space<vmem>>, %arg6: memref<8x384xf32, #tpu.memory_space<vmem>>) attributes {dimension_semantics = [#tpu.dimension_semantics<parallel>], iteration_bounds = array<i64: 2>, scalar_prefetch = 0 : i64, scratch_operands = 0 : i64, tpu.core_type = #tpu.core_type<tc>, window_params = [{transform_indices = @transform_0, window_bounds = array<i64: 8, 384>}, {pipeline_mode = #tpu.pipeline_mode<synchronous>, transform_indices = @transform_1, window_bounds = array<i64: 384, 1536>}, {pipeline_mode = #tpu.pipeline_mode<synchronous>, transform_indices = @transform_2, window_bounds = array<i64: 1, 1536>}, {pipeline_mode = #tpu.pipeline_mode<synchronous>, transform_indices = @transform_3, window_bounds = array<i64: 1536, 384>}, {pipeline_mode = #tpu.pipeline_mode<synchronous>, transform_indices = @transform_4, window_bounds = array<i64: 1, 384>}, {transform_indices = @transform_5, window_bounds = array<i64: 8, 384>}]} {
    %c0 = arith.constant 0 : index
    %c0_0 = arith.constant 0 : index
    %0 = vector.load %arg1[%c0, %c0_0] : memref<8x384xf32, #tpu.memory_space<vmem>>, vector<8x384xf32>
    %1 = arith.truncf %0 : vector<8x384xf32> to vector<8x384xbf16>
    %c0_1 = arith.constant 0 : index
    %c0_2 = arith.constant 0 : index
    %2 = vector.load %arg2[%c0_1, %c0_2] : memref<384x1536xbf16, #tpu.memory_space<vmem>>, vector<384x1536xbf16>
    %cst = arith.constant dense<0.000000e+00> : vector<8x1536xf32>
    %3 = tpu.matmul %1, %2, %cst {dimension_numbers = #tpu.dot_dimension_numbers<[1], [0], [0], [1], [0, 0, 1, 1], [], []>} : vector<8x384xbf16>, vector<384x1536xbf16>, vector<8x1536xf32> -> vector<8x1536xf32>
    %c0_3 = arith.constant 0 : index
    %c0_4 = arith.constant 0 : index
    %4 = vector.load %arg3[%c0_3, %c0_4] : memref<1x1536xf32, #tpu.memory_space<vmem>>, vector<1x1536xf32>
    %5 = vector.broadcast %4 : vector<1x1536xf32> to vector<8x1536xf32>
    %6 = arith.addf %3, %5 : vector<8x1536xf32>
    %cst_5 = arith.constant 0.000000e+00 : f32
    %7 = vector.broadcast %cst_5 : f32 to vector<8x1536xf32>
    %8 = arith.maximumf %6, %7 : vector<8x1536xf32>
    %9 = arith.truncf %8 : vector<8x1536xf32> to vector<8x1536xbf16>
    %c0_6 = arith.constant 0 : index
    %c0_7 = arith.constant 0 : index
    %10 = vector.load %arg4[%c0_6, %c0_7] : memref<1536x384xbf16, #tpu.memory_space<vmem>>, vector<1536x384xbf16>
    %cst_8 = arith.constant dense<0.000000e+00> : vector<8x384xf32>
    %11 = tpu.matmul %9, %10, %cst_8 {dimension_numbers = #tpu.dot_dimension_numbers<[1], [0], [0], [1], [0, 0, 1, 1], [], []>} : vector<8x1536xbf16>, vector<1536x384xbf16>, vector<8x384xf32> -> vector<8x384xf32>
    %c0_9 = arith.constant 0 : index
    %c0_10 = arith.constant 0 : index
    %12 = vector.load %arg5[%c0_9, %c0_10] : memref<1x384xf32, #tpu.memory_space<vmem>>, vector<1x384xf32>
    %13 = vector.broadcast %12 : vector<1x384xf32> to vector<8x384xf32>
    %14 = arith.addf %11, %13 : vector<8x384xf32>
    %c0_11 = arith.constant 0 : index
    %c0_12 = arith.constant 0 : index
    %15 = vector.load %arg6[%c0_11, %c0_12] : memref<8x384xf32, #tpu.memory_space<vmem>>, vector<8x384xf32>
    tpu.vector_store %arg6[%c0_11, %c0_12], %14 {strides = array<i32>} : memref<8x384xf32, #tpu.memory_space<vmem>>, vector<8x384xf32>,
    return
  }
  func.func @transform_0(%arg0: i32) -> (i32, i32) {
    %c0_i32 = arith.constant 0 : i32
    %c0_i32_0 = arith.constant 0 : i32
    return %arg0, %c0_i32 : i32, i32
  }
  func.func @transform_1(%arg0: i32) -> (i32, i32) {
    %c0_i32 = arith.constant 0 : i32
    %c0_i32_0 = arith.constant 0 : i32
    %c0_i32_1 = arith.constant 0 : i32
    return %c0_i32, %c0_i32_0 : i32, i32
  }
  func.func @transform_2(%arg0: i32) -> (i32, i32) {
    %c0_i32 = arith.constant 0 : i32
    %c0_i32_0 = arith.constant 0 : i32
    %c0_i32_1 = arith.constant 0 : i32
    return %c0_i32, %c0_i32_0 : i32, i32
  }
  func.func @transform_3(%arg0: i32) -> (i32, i32) {
    %c0_i32 = arith.constant 0 : i32
    %c0_i32_0 = arith.constant 0 : i32
    %c0_i32_1 = arith.constant 0 : i32
    return %c0_i32, %c0_i32_0 : i32, i32
  }
  func.func @transform_4(%arg0: i32) -> (i32, i32) {
    %c0_i32 = arith.constant 0 : i32
    %c0_i32_0 = arith.constant 0 : i32
    %c0_i32_1 = arith.constant 0 : i32
    return %c0_i32, %c0_i32_0 : i32, i32
  }
  func.func @transform_5(%arg0: i32) -> (i32, i32) {
    %c0_i32 = arith.constant 0 : i32
    %c0_i32_0 = arith.constant 0 : i32
    return %arg0, %c0_i32 : i32, i32
  }
}

</mosaic_0001>

<bundles_post_ra>
// kernel: feed_forward.1
= control target key start
LH: loop header
LB: loop body
LE: loop exit
PB: predicated region body
PF: predicated region fallthrough
CT: control target
= control target key end

     0   :  { %10 = vsyncpa [#allocation3], 0  ;;  %s7350_s0 = inlined_call_operand.hbm [shape: f32[16,384], index: 0, kind: input, shape index: {}]   ;;  %s7351_s1 = inlined_call_operand.hbm [shape: bf16[384,1536], index: 1, kind: input, shape index: {}]   ;;  %s7352_s2 = inlined_call_operand.vmem [shape: f32[1,1536], index: 2, kind: input, shape index: {}]   ;;  %s7353_s3 = inlined_call_operand.hbm [shape: bf16[1536,384], index: 3, kind: input, shape index: {}]   ;;  %s7354_s4 = inlined_call_operand.vmem [shape: f32[1,384], index: 4, kind: input, shape index: {}]   ;;  %s7355_s5 = inlined_call_operand.hbm [shape: f32[16,384], index: 5, kind: output, shape index: {}]  }
   0x1   :  { %12 = vsyncpa [#allocation3 + $0x1], 0 }
   0x2   :  { %13 = vsyncpa [#allocation6], 0 }
   0x3   :  { %14 = vsyncpa [#allocation4], 0 }
   0x4   :  { %16 = vsyncpa [#allocation4 + $0x1], 0  ;;  %s6983_s18 = smov 0   ;;  %s6985_s19 = smov 0  }
   0x5   :  { %s6987_s20 = smov 0   ;;  %s6989_s21 = smov 0  }
   0x6 LB: > { %s7004_s22 = sadd.s32 4294967295, %s6942_s21   ;;  %s5115_s23 = sadd.s32 4294967294, %s6942_s21   ;;  %s6942_s21 = sphi %s6989_s21, %s7375_s21   ;;  %s6938_s20 = sphi %s6987_s20, %s7374_s20   ;;  %s6934_s19 = sphi %s6985_s19, %s7373_s19   ;;  %s6930_s18 = sphi %s6983_s18, %s7372_s18  }
   0x7   : > { %p42_p0 = scmp.ne.s32.totalorder %s6934_s19, %s6930_s18  ;;  %p7356_p1 = scmp.eq.s32.totalorder %s7004_s22, 0 }
   0x8   : > { %p156_p3 = scmp.eq.s32.totalorder %s5115_s23, 1  ;;  %p5116_p5 = scmp.ge.s32.totalorder %s6942_s21, 1 }
   0x9   : > { %p7013_p4 = por %p7356_p1, %p42_p0  ;;  %p163_p7 = scmp.lt.s32.totalorder %s6942_s21, 3 }
   0xa   : > { %p7018_p6 = por %p156_p3, %p42_p0  ;;  %s6944_s27 = smov [#allocation5]  }
   0xb   : > { %s7359_s24 = scalar_select %p7013_p4, 1, 0 }
   0xc   : > { %s7360_s25 = scalar_select %p7018_p6, 1, 0 }
   0xd   : > { %p7023_p8 = pnand %p5116_p5, %p163_p7  ;;  %s175_s28 = sshll.u32 %s6944_s27, 4  ;;  %s7027_s28 = int_to_ptr.vmem [resolvable:$true] %s175_s28 }
   0xe   : > { %s6945_s30 = smov [#allocation7]   ;;  %s6786_s9 = scalar_lea.hbm %s7351_s1, 36864 }
   0xf   : > { %p5909_p9 = pneg %p7023_p8  ;;  %s191_s6 = sshll.u32 %s6945_s30, 4  ;;  %s7038_s6 = int_to_ptr.vmem [resolvable:$true] %s191_s6 }
  0x10   : > { %p6787_p12 = scmp.ne.s32.totalorder %s7351_s1, %s6786_s9  ;;  %p6793_p5 = scmp.lt.u32.totalorder %s6786_s9, %s7351_s1 }
  0x11   : > { %p7034_p11 = pnand %p5909_p9, %p7356_p1 }
  0x13   : > { %p6788_p13 = pneg %p7034_p11 }
  0x15   : > { %p6789_p0 = pnand %p6788_p13, %p6787_p12 }
  0x17   : > { %p6790_p3 = pneg %p6789_p0 }
  0x19   : > { %p6795_p7 = pnand %p6793_p5, %p6790_p3 }
  0x1b   : > { %6798 = shalt.err (!%p6795_p7)
}
  0x1c   : > { %s6799_s14 = scalar_lea.vmem %s7027_s28, 36864  ;;  %p6807_p2 = scmp.lt.s32.totalorder %s7027_s28, %s7027_s28 }
  0x1d   : > { %p6800_p9 = scmp.ne.s32.totalorder %s7027_s28, %s6799_s14  ;;  %p6808_p12 = scmp.lt.s32.totalorder %s6799_s14, %s6799_s14 }
  0x1f   : > { %p6802_p10 = pnand %p6800_p9, %p6788_p13  ;;  %p6809_p0 = por %p6808_p12, %p6807_p2 }
  0x21   : > { %p6803_p1 = pneg %p6802_p10 }
  0x23   : > { %p6810_p6 = pnand %p6809_p0, %p6803_p1 }
  0x25   : > { %6813 = shalt.err (!%p6810_p6)
}
  0x26   : > { %s6946_s15 = smov 768   ;;  %s6947_s16 = smov 48  }
  0x27   : > { %5912 = dma.hbm_to_vmem [thread:$0]  (!%p7034_p11), %s7351_s1, 36864, %s7027_s28, [#allocation6], %s6946_s15, %s6946_s15, %s6947_s16  }
  0x28   : > { %s6814_s7 = scalar_lea.hbm %s7353_s3, 36864 }
  0x29   : > { %p6815_p2 = scmp.ne.s32.totalorder %s7353_s3, %s6814_s7  ;;  %p6821_p10 = scmp.lt.u32.totalorder %s6814_s7, %s7353_s3 }
  0x2b   : > { %p6817_p1 = pnand %p6815_p2, %p6788_p13 }
  0x2d   : > { %p6818_p6 = pneg %p6817_p1 }
  0x2f   : > { %p6823_p3 = pnand %p6821_p10, %p6818_p6 }
  0x31   : > { %6826 = shalt.err (!%p6823_p3)
}
  0x32   : > { %s6827_s28 = scalar_lea.vmem %s7038_s6, 36864  ;;  %p6835_p12 = scmp.lt.s32.totalorder %s7038_s6, %s7038_s6 }
  0x33   : > { %p6828_p5 = scmp.ne.s32.totalorder %s7038_s6, %s6827_s28  ;;  %p6836_p0 = scmp.lt.s32.totalorder %s6827_s28, %s6827_s28 }
  0x35   : > { %p6830_p7 = pnand %p6828_p5, %p6788_p13  ;;  %p6837_p2 = por %p6836_p0, %p6835_p12 }
  0x37   : > { %p6831_p9 = pneg %p6830_p7 }
  0x39   : > { %p6838_p1 = pnand %p6837_p2, %p6831_p9 }
  0x3b   : > { %6841 = shalt.err (!%p6838_p1)
}
  0x3c   : > { %s6948_s12 = smov 192   ;;  %s6949_s13 = smov 12  }
  0x3d   : > { %5915 = dma.hbm_to_vmem [thread:$0]  (!%p7034_p11), %s7353_s3, 36864, %s7038_s6, [#allocation6], %s6948_s12, %s6948_s12, %s6949_s13  }
  0x3e   : > { %s7093_s16 = sadd.s32 1, %s6942_s21   ;;  %s29_s23 = sadd.s32 1, %s6938_s20 }
  0x3f   : > { %s26_s17 = ssub.s32 %s6942_s21, %s7093_s16  ;;  %p36_p6 = scmp.ne.s32.totalorder %s6938_s20, %s6934_s19 }
  0x40   : > { %p27_p13 = scmp.eq.s32.totalorder %s26_s17, 0  ;;  %p37_p10 = scmp.eq.s32.totalorder %s6942_s21, 0 }
  0x41   : > { %p7363_p5 = scmp.eq.s32.totalorder %s7004_s22, 1  ;;  %p5926_p9 = scmp.lt.s32.totalorder %s6942_s21, 2 }
  0x42   : > { %s7102_s27 = scalar_select %p27_p13, %s6938_s20, %s29_s23  }
  0x43   : > { %p38_p3 = por %p37_p10, %p36_p6  ;;  %p7106_p7 = por %p7363_p5, %p36_p6 }
  0x44   : > { %s208_s29 = sand.u32 1, %s6938_s20   ;;  %s5894_s6 = smul.u32 384, %s6942_s21 }
  0x45   : > { %s7364_s30 = scalar_select %p7106_p7, 1, 0 }
  0x46   : > { %s5893_s7 = smul.u32 24, %s208_s29  ;;  %p7113_p11 = pnand %p5926_p9, %p38_p3 }
  0x47   : > { %s7120_s11 = scalar_lea.hbm %s7350_s0, %s5894_s6  ;;  %s209_s13 = scalar_lea.sflag [#allocation3], %s208_s29 }
  0x48   : > { %s212_s28 = scalar_lea.vmem [#allocation2], %s5893_s7  ;;  %s6842_s14 = scalar_lea.hbm %s7120_s11, 384 }
  0x49   : > { %s220_s12 = sshll.u32 %s212_s28, 4  ;;  %p6843_p12 = scmp.ne.s32.totalorder %s7120_s11, %s6842_s14  ;;  %s7122_s12 = int_to_ptr.vmem [resolvable:$true] %s220_s12 }
  0x4a   : > { %p6844_p0 = pneg %p7113_p11  ;;  %s6847_s23 = scalar_lea.hbm %s7350_s0, 768 }
  0x4b   : > { %p6848_p13 = scmp.lt.u32.totalorder %s7120_s11, %s7350_s0  ;;  %p6849_p6 = scmp.lt.u32.totalorder %s6847_s23, %s6842_s14 }
  0x4c   : > { %p6845_p2 = pnand %p6844_p0, %p6843_p12  ;;  %p6851_p3 = scmp.lt.u32.totalorder %s6842_s14, %s7120_s11 }
  0x4d   : > { %p6850_p10 = por %p6849_p6, %p6848_p13 }
  0x4e   : > { %p6846_p1 = pneg %p6845_p2 }
  0x4f   : > { %p6852_p5 = por %p6851_p3, %p6850_p10 }
  0x51   : > { %p6853_p9 = pnand %p6852_p5, %p6846_p1 }
  0x53   : > { %6856 = shalt.err (!%p6853_p9)
}
  0x54   : > { %s6857_s29 = scalar_lea.vmem %s7122_s12, 384  ;;  %s6950_s7 = smov [#allocation2]  }
  0x55   : > { %p6858_p12 = scmp.ne.s32.totalorder %s7122_s12, %s6857_s29  ;;  %s6862_s10 = sshll.u32 %s6950_s7, 4  ;;  %s6863_s10 = int_to_ptr.vmem [resolvable:$false] %s6862_s10 }
  0x56   : > { %s6864_s28 = scalar_lea.vmem %s6863_s10, 768  ;;  %p6865_p4 = scmp.lt.s32.totalorder %s7122_s12, %s6863_s10 }
  0x57   : > { %p6860_p2 = pnand %p6858_p12, %p6844_p0  ;;  %p6866_p13 = scmp.lt.s32.totalorder %s6864_s28, %s6857_s29 }
  0x59   : > { %p6861_p7 = pneg %p6860_p2  ;;  %p6867_p6 = por %p6866_p13, %p6865_p4 }
  0x5b   : > { %p6868_p10 = pnand %p6867_p6, %p6861_p7 }
  0x5d   : > { %6871 = shalt.err (!%p6868_p10)
}
  0x5e   : > { %5919 = dma.hbm_to_vmem [thread:$0]  (!%p7113_p11), %s7120_s11, 384, %s7122_s12, %s209_s13  }
  0x5f   : > { %229 = sbr.rel (%p7023_p8) target bundleno = 1004 (0x3ec), region = 40  ;;  %s7152_s14 = sand.u32 (!%p7023_p8), 1, %s6934_s19  }
  0x60   : > { %s5895_s15 = smul.u32 (!%p7023_p8), 24, %s7152_s14  ;;  %s232_s17 = scalar_lea.sflag (!%p7023_p8), [#allocation3], %s7152_s14 }
  0x61   : > { %p7366_p4 = scmp.ne.s32.totalorder (!%p7023_p8), %s7359_s24, 0 }
  0x62   : > { %s7158_s23 = scalar_lea.vmem (!%p7023_p8), [#allocation2], %s5895_s15 }
  0x66   : > { %6917 = dma.done.wait (%p7366_p4), %s232_s17, 384  }
  0x67   : > { %6919 = vsyncadd (%p7366_p4), %s232_s17, 4294966912  ;;  %p7367_p7 = scmp.eq.s32.totalorder %s7004_s22, 0 }
  0x69   : > { %6921 = dma.done.wait (%p7367_p7), [#allocation6], 73728   ;;  %p7368_p8 = pmov %p7367_p7 }
  0x6a   : > { %v5969_v0 = vld [vmem:[#allocation5 + $0x4] ss:$48 sps:$4 sm:$0xff]   ;;  %v5971_v1 = vld [vmem:[#allocation5] ss:$48 sps:$4 sm:$0xff]   ;;  %s269_s29 = scalar_lea.vmem [#allocation8], %s5895_s15  ;;  %s5896_s7 = smul.u32 384, %s7004_s22 }
  0x6b   : > { %6923 = vsyncadd (%p7368_p8), [#allocation6], 4294893568  ;;  %2069 = vmatprep.subr.bf16.mxu1 %v5969_v0  ;;  %v5972_v2 = vld [vmem:[#allocation5 + $0x64] ss:$48 sps:$4 sm:$0xff]   ;;  %v5974_v3 = vld [vmem:[#allocation5 + $0x60] ss:$48 sps:$4 sm:$0xff]  }
  0x6c   : > { %2070 = vmatpush1.bf16.msra.mxu1 %v5971_v1  ;;  %v5975_v4 = vld [vmem:[#allocation5 + $0xc4] ss:$48 sps:$4 sm:$0xff]   ;;  %v5977_v5 = vld [vmem:[#allocation5 + $0xc0] ss:$48 sps:$4 sm:$0xff]   ;;  %v6951_v1 = vmov 0   ;;  %s5026_s10 = sshll.u32 %s269_s29, 4  ;;  %s7308_s10 = int_to_ptr.vmem [resolvable:$true] %s5026_s10 }
  0x6d   : > { %2071 = vmatprep.subr.bf16.mxu1 %v5972_v2  ;;  %v5978_v6 = vld [vmem:[#allocation5 + $0x124] ss:$48 sps:$4 sm:$0xff]   ;;  %v5980_v7 = vld [vmem:[#allocation5 + $0x120] ss:$48 sps:$4 sm:$0xff]   ;;  %s5012_s22 = scalar_lea.sflag [#allocation4], %s7152_s14  ;;  %s6872_s15 = scalar_lea.vmem %s7308_s10, 384 }
  0x6e   : > { %v5981_v8 = vld [vmem:[#allocation5 + $0x184] ss:$48 sps:$4 sm:$0xff]   ;;  %v5983_v9 = vld [vmem:[#allocation5 + $0x180] ss:$48 sps:$4 sm:$0xff]   ;;  %p6873_p11 = scmp.ne.s32.totalorder %s7308_s10, %s6872_s15  ;;  %p7369_p0 = scmp.ne.s32.totalorder %s7364_s30, 0 }
  0x6f   : > { %v5984_v10 = vld [vmem:[#allocation5 + $0x1e4] ss:$48 sps:$4 sm:$0xff]   ;;  %v5986_v11 = vld [vmem:[#allocation5 + $0x1e0] ss:$48 sps:$4 sm:$0xff]   ;;  %s6952_s24 = smov [#allocation8]  }
  0x70   : > { %2072 = vmatpush1.bf16.msra.mxu1 %v5974_v3  ;;  %v5987_v12 = vld [vmem:[#allocation5 + $0x244] ss:$48 sps:$4 sm:$0xff]   ;;  %v6016_v14 = vld [vmem:[#allocation5 + $0x10] ss:$48 sps:$4 sm:$0xff]   ;;  %p6874_p1 = pnand %p6873_p11, %p7369_p0  ;;  %s6876_s26 = sshll.u32 %s6952_s24, 4  ;;  %s6877_s26 = int_to_ptr.vmem [resolvable:$false] %s6876_s26 }
  0x71   : > { %2073 = vmatprep.subr.bf16.mxu1 %v5975_v4  ;;  %v6014_v13 = vld [vmem:[#allocation5 + $0x14] ss:$48 sps:$4 sm:$0xff]   ;;  %v5989_v15 = vld [vmem:[#allocation5 + $0x240] ss:$48 sps:$4 sm:$0xff]   ;;  %s6878_s8 = scalar_lea.vmem %s6877_s26, 768  ;;  %p6879_p5 = scmp.lt.s32.totalorder %s7308_s10, %s6877_s26 }
  0x72   : > { %v5990_v16 = vld [vmem:[#allocation5 + $0x2a4] ss:$48 sps:$4 sm:$0xff]   ;;  %2233 = vmatprep.subr.bf16.mxu0 %v6014_v13  ;;  %v6022_v18 = vld [vmem:[#allocation5 + $0x70] ss:$48 sps:$4 sm:$0xff]   ;;  %p6875_p3 = pneg %p6874_p1  ;;  %p6880_p9 = scmp.lt.s32.totalorder %s6878_s8, %s6872_s15 }
  0x73   : > { %2234 = vmatpush1.bf16.msra.mxu0 %v6016_v14  ;;  %v6020_v17 = vld [vmem:[#allocation5 + $0x74] ss:$48 sps:$4 sm:$0xff]   ;;  %v5992_v20 = vld [vmem:[#allocation5 + $0x2a0] ss:$48 sps:$4 sm:$0xff]  }
  0x74   : > { %2074 = vmatpush1.bf16.msra.mxu1 %v5977_v5  ;;  %v272_v19 = vld [vmem:[%s7158_s23 + $0x8] sm:$0xff]  ;;  %2235 = vmatprep.subr.bf16.mxu0 %v6020_v17  ;;  %v271_v55 = vld [vmem:[%s7158_s23] sm:$0xff]  ;;  %p6881_p12 = por %p6880_p9, %p6879_p5 }
  0x75   : > { %2075 = vmatprep.subr.bf16.mxu1 %v5978_v6  ;;  %v7169_v21 = vpack.c.bf16 %v272_v19, %v272_v19  ;;  %v6026_v22 = vld [vmem:[#allocation5 + $0xd4] ss:$48 sps:$4 sm:$0xff]   ;;  %v6028_v23 = vld [vmem:[#allocation5 + $0xd0] ss:$48 sps:$4 sm:$0xff]   ;;  %v7174_v59 = vpack.c.bf16 %v271_v55, %v271_v55 }
  0x76   : > { %v5993_v24 = vld [vmem:[#allocation5 + $0x304] ss:$48 sps:$4 sm:$0xff]   ;;  %v5995_v26 = vld [vmem:[#allocation5 + $0x300] ss:$48 sps:$4 sm:$0xff]   ;;  %p6882_p2 = pnand %p6881_p12, %p6875_p3 }
  0x77   : > { %2236 = vmatpush1.bf16.msra.mxu0 %v6022_v18  ;;  %2101 = vmatprep.mubr.bf16.mxu1 %v7169_v21  ;;  %v6032_v25 = vld [vmem:[#allocation5 + $0x134] ss:$48 sps:$4 sm:$0xff]   ;;  %v6034_v27 = vld [vmem:[#allocation5 + $0x130] ss:$48 sps:$4 sm:$0xff]  }
  0x78   : > { %2076 = vmatpush1.bf16.msra.mxu1 %v5980_v7  ;;  %2237 = vmatprep.subr.bf16.mxu0 %v6026_v22  ;;  %v5996_v28 = vld [vmem:[#allocation5 + $0x364] ss:$48 sps:$4 sm:$0xff]   ;;  %v5998_v30 = vld [vmem:[#allocation5 + $0x360] ss:$48 sps:$4 sm:$0xff]  }
  0x79   : > { %2077 = vmatprep.subr.bf16.mxu1 %v5981_v8  ;;  %2265 = vmatprep.mubr.bf16.mxu0 %v7169_v21  ;;  %v6038_v29 = vld [vmem:[#allocation5 + $0x194] ss:$48 sps:$4 sm:$0xff]   ;;  %v6040_v31 = vld [vmem:[#allocation5 + $0x190] ss:$48 sps:$4 sm:$0xff]  }
  0x7a   : > { %v5999_v32 = vld [vmem:[#allocation5 + $0x3c4] ss:$48 sps:$4 sm:$0xff]   ;;  %v6001_v34 = vld [vmem:[#allocation5 + $0x3c0] ss:$48 sps:$4 sm:$0xff]  }
  0x7b   : > { %2238 = vmatpush1.bf16.msra.mxu0 %v6028_v23  ;;  %v6044_v33 = vld [vmem:[#allocation5 + $0x1f4] ss:$48 sps:$4 sm:$0xff]   ;;  %v6046_v35 = vld [vmem:[#allocation5 + $0x1f0] ss:$48 sps:$4 sm:$0xff]  }
  0x7c   : > { %2078 = vmatpush1.bf16.msra.mxu1 %v5983_v9  ;;  %2239 = vmatprep.subr.bf16.mxu0 %v6032_v25  ;;  %v6002_v36 = vld [vmem:[#allocation5 + $0x424] ss:$48 sps:$4 sm:$0xff]   ;;  %v6004_v38 = vld [vmem:[#allocation5 + $0x420] ss:$48 sps:$4 sm:$0xff]  }
  0x7d   : > { %2079 = vmatprep.subr.bf16.mxu1 %v5984_v10  ;;  %v6050_v37 = vld [vmem:[#allocation5 + $0x254] ss:$48 sps:$4 sm:$0xff]   ;;  %v6052_v39 = vld [vmem:[#allocation5 + $0x250] ss:$48 sps:$4 sm:$0xff]  }
  0x7e   : > { %v6005_v40 = vld [vmem:[#allocation5 + $0x484] ss:$48 sps:$4 sm:$0xff]   ;;  %v6007_v42 = vld [vmem:[#allocation5 + $0x480] ss:$48 sps:$4 sm:$0xff]  }
  0x7f   : > { %2240 = vmatpush1.bf16.msra.mxu0 %v6034_v27  ;;  %v6056_v41 = vld [vmem:[#allocation5 + $0x2b4] ss:$48 sps:$4 sm:$0xff]   ;;  %v6058_v43 = vld [vmem:[#allocation5 + $0x2b0] ss:$48 sps:$4 sm:$0xff]  }
  0x80   : > { %2080 = vmatpush1.bf16.msra.mxu1 %v5986_v11  ;;  %2241 = vmatprep.subr.bf16.mxu0 %v6038_v29  ;;  %v6008_v44 = vld [vmem:[#allocation5 + $0x4e4] ss:$48 sps:$4 sm:$0xff]   ;;  %v6010_v46 = vld [vmem:[#allocation5 + $0x4e0] ss:$48 sps:$4 sm:$0xff]  }
  0x81   : > { %2081 = vmatprep.subr.bf16.mxu1 %v5987_v12  ;;  %v6062_v45 = vld [vmem:[#allocation5 + $0x314] ss:$48 sps:$4 sm:$0xff]   ;;  %v6064_v47 = vld [vmem:[#allocation5 + $0x310] ss:$48 sps:$4 sm:$0xff]  }
  0x82   : > { %v6011_v48 = vld [vmem:[#allocation5 + $0x544] ss:$48 sps:$4 sm:$0xff]   ;;  %v6013_v50 = vld [vmem:[#allocation5 + $0x540] ss:$48 sps:$4 sm:$0xff]  }
  0x83   : > { %2242 = vmatpush1.bf16.msra.mxu0 %v6040_v31  ;;  %v6068_v49 = vld [vmem:[#allocation5 + $0x374] ss:$48 sps:$4 sm:$0xff]   ;;  %v6070_v51 = vld [vmem:[#allocation5 + $0x370] ss:$48 sps:$4 sm:$0xff]  }
  0x84   : > { %2082 = vmatpush1.bf16.msra.mxu1 %v5989_v15  ;;  %2243 = vmatprep.subr.bf16.mxu0 %v6044_v33  ;;  %v6017_v52 = vld [vmem:[#allocation5 + $0x5a4] ss:$48 sps:$4 sm:$0xff]   ;;  %v6019_v54 = vld [vmem:[#allocation5 + $0x5a0] ss:$48 sps:$4 sm:$0xff]   ;;  %v6079_v33 = vld [vmem:[#allocation5 + $0x6c] ss:$48 sps:$4 sm:$0xff]  }
  0x85   : > { %2083 = vmatprep.subr.bf16.mxu1 %v5990_v16  ;;  %v6074_v53 = vld [vmem:[#allocation5 + $0x3d4] ss:$48 sps:$4 sm:$0xff]   ;;  %v6076_v56 = vld [vmem:[#allocation5 + $0x3d0] ss:$48 sps:$4 sm:$0xff]  }
  0x86   : > { %v6025_v57 = vld [vmem:[#allocation5 + $0x604] ss:$48 sps:$4 sm:$0xff]   ;;  %v6023_v60 = vld [vmem:[#allocation5 + $0x600] ss:$48 sps:$4 sm:$0xff]  }
  0x87   : > { %2244 = vmatpush1.bf16.msra.mxu0 %v6046_v35  ;;  %v6080_v58 = vld [vmem:[#allocation5 + $0x434] ss:$48 sps:$4 sm:$0xff]   ;;  %v6082_v62 = vld [vmem:[#allocation5 + $0x430] ss:$48 sps:$4 sm:$0xff]  }
  0x88   : > { %2084 = vmatpush1.bf16.msra.mxu1 %v5992_v20  ;;  %2245 = vmatprep.subr.bf16.mxu0 %v6050_v37  ;;  %v6031_v61 = vld [vmem:[#allocation5 + $0x664] ss:$48 sps:$4 sm:$0xff]   ;;  %v6029_v0 = vld [vmem:[#allocation5 + $0x660] ss:$48 sps:$4 sm:$0xff]   ;;  %v6085_v37 = vld [vmem:[#allocation5 + $0xcc] ss:$48 sps:$4 sm:$0xff]  }
  0x89   : > { %2085 = vmatprep.subr.bf16.mxu1 %v5993_v24  ;;  %v6086_v63 = vld [vmem:[#allocation5 + $0x494] ss:$48 sps:$4 sm:$0xff]   ;;  %v6088_v3 = vld [vmem:[#allocation5 + $0x490] ss:$48 sps:$4 sm:$0xff]  }
  0x8a   : > { %v6037_v2 = vld [vmem:[#allocation5 + $0x6c4] ss:$48 sps:$4 sm:$0xff]   ;;  %v6035_v5 = vld [vmem:[#allocation5 + $0x6c0] ss:$48 sps:$4 sm:$0xff]  }
  0x8b   : > { %2246 = vmatpush1.bf16.msra.mxu0 %v6052_v39  ;;  %v6092_v4 = vld [vmem:[#allocation5 + $0x4f4] ss:$48 sps:$4 sm:$0xff]   ;;  %v6094_v7 = vld [vmem:[#allocation5 + $0x4f0] ss:$48 sps:$4 sm:$0xff]  }
  0x8c   : > { %2086 = vmatpush1.bf16.msra.mxu1 %v5995_v26  ;;  %2247 = vmatprep.subr.bf16.mxu0 %v6056_v41  ;;  %v6043_v6 = vld [vmem:[#allocation5 + $0x724] ss:$48 sps:$4 sm:$0xff]   ;;  %v6041_v9 = vld [vmem:[#allocation5 + $0x720] ss:$48 sps:$4 sm:$0xff]   ;;  %v6091_v41 = vld [vmem:[#allocation5 + $0x12c] ss:$48 sps:$4 sm:$0xff]  }
  0x8d   : > { %2087 = vmatprep.subr.bf16.mxu1 %v5996_v28  ;;  %v6098_v8 = vld [vmem:[#allocation5 + $0x554] ss:$48 sps:$4 sm:$0xff]   ;;  %v6100_v11 = vld [vmem:[#allocation5 + $0x550] ss:$48 sps:$4 sm:$0xff]   ;;  %v6073_v28 = vld [vmem:[#allocation5 + $0xc] ss:$48 sps:$4 sm:$0xff]  }
  0x8e   : > { %v6049_v10 = vld [vmem:[#allocation5 + $0x784] ss:$48 sps:$4 sm:$0xff]   ;;  %v6047_v13 = vld [vmem:[#allocation5 + $0x780] ss:$48 sps:$4 sm:$0xff]  }
  0x8f   : > { %2248 = vmatpush1.bf16.msra.mxu0 %v6058_v43  ;;  %v6104_v12 = vld [vmem:[#allocation5 + $0x5b4] ss:$48 sps:$4 sm:$0xff]   ;;  %v6106_v15 = vld [vmem:[#allocation5 + $0x5b0] ss:$48 sps:$4 sm:$0xff]  }
  0x90   : > { %2088 = vmatpush1.bf16.msra.mxu1 %v5998_v30  ;;  %2249 = vmatprep.subr.bf16.mxu0 %v6062_v45  ;;  %v6055_v14 = vld [vmem:[#allocation5 + $0x7e4] ss:$48 sps:$4 sm:$0xff]   ;;  %v6053_v17 = vld [vmem:[#allocation5 + $0x7e0] ss:$48 sps:$4 sm:$0xff]   ;;  %v6097_v45 = vld [vmem:[#allocation5 + $0x18c] ss:$48 sps:$4 sm:$0xff]  }
  0x91   : > { %2089 = vmatprep.subr.bf16.mxu1 %v5999_v32  ;;  %v6112_v16 = vld [vmem:[#allocation5 + $0x614] ss:$48 sps:$4 sm:$0xff]   ;;  %v6110_v19 = vld [vmem:[#allocation5 + $0x610] ss:$48 sps:$4 sm:$0xff]   ;;  %v6071_v32 = vld [vmem:[#allocation5 + $0x8] ss:$48 sps:$4 sm:$0xff]  }
  0x92   : > { %v6061_v18 = vld [vmem:[#allocation5 + $0x844] ss:$48 sps:$4 sm:$0xff]   ;;  %v6059_v22 = vld [vmem:[#allocation5 + $0x840] ss:$48 sps:$4 sm:$0xff]  }
  0x93   : > { %2250 = vmatpush1.bf16.msra.mxu0 %v6064_v47  ;;  %v6118_v20 = vld [vmem:[#allocation5 + $0x674] ss:$48 sps:$4 sm:$0xff]   ;;  %v6116_v24 = vld [vmem:[#allocation5 + $0x670] ss:$48 sps:$4 sm:$0xff]  }
  0x94   : > { %2090 = vmatpush1.bf16.msra.mxu1 %v6001_v34  ;;  %2251 = vmatprep.subr.bf16.mxu0 %v6068_v49  ;;  %v6067_v23 = vld [vmem:[#allocation5 + $0x8a4] ss:$48 sps:$4 sm:$0xff]   ;;  %v6065_v26 = vld [vmem:[#allocation5 + $0x8a0] ss:$48 sps:$4 sm:$0xff]   ;;  %v6103_v49 = vld [vmem:[#allocation5 + $0x1ec] ss:$48 sps:$4 sm:$0xff]  }
  0x95   : > { %2091 = vmatprep.subr.bf16.mxu1 %v6002_v36  ;;  %v6124_v25 = vld [vmem:[#allocation5 + $0x6d4] ss:$48 sps:$4 sm:$0xff]   ;;  %v6122_v29 = vld [vmem:[#allocation5 + $0x6d0] ss:$48 sps:$4 sm:$0xff]   ;;  %v6077_v36 = vld [vmem:[#allocation5 + $0x68] ss:$48 sps:$4 sm:$0xff]  }
  0x96   : > { %v273_v27 = vld [vmem:[%s7158_s23 + $0x10] sm:$0xff]  ;;  %s7306_s23 = scalar_lea.hbm %s7355_s5, %s5896_s7 }
  0x97   : > { %2252 = vmatpush1.bf16.msra.mxu0 %v6070_v51  ;;  %v6130_v30 = vld [vmem:[#allocation5 + $0x734] ss:$48 sps:$4 sm:$0xff]   ;;  %v7181_v31 = vpack.c.bf16 %v273_v27, %v273_v27  ;;  %v6128_v34 = vld [vmem:[#allocation5 + $0x730] ss:$48 sps:$4 sm:$0xff]   ;;  %v6155_v27 = vld [vmem:[#allocation5 + $0x548] ss:$48 sps:$4 sm:$0xff]  }
  0x98   : > { %2092 = vmatpush1.bf16.msra.mxu1 %v6004_v38  ;;  %2253 = vmatprep.subr.bf16.mxu0 %v6074_v53  ;;  %v6136_v35 = vld [vmem:[#allocation5 + $0x794] ss:$48 sps:$4 sm:$0xff]   ;;  %v6134_v38 = vld [vmem:[#allocation5 + $0x790] ss:$48 sps:$4 sm:$0xff]   ;;  %v6109_v53 = vld [vmem:[#allocation5 + $0x24c] ss:$48 sps:$4 sm:$0xff]  }
  0x99   : > { %2093 = vmatprep.subr.bf16.mxu1 %v6005_v40  ;;  %v6142_v39 = vld [vmem:[#allocation5 + $0x7f4] ss:$48 sps:$4 sm:$0xff]   ;;  %v6083_v40 = vld [vmem:[#allocation5 + $0xc8] ss:$48 sps:$4 sm:$0xff]  }
  0x9a   : > { %v6148_v43 = vld [vmem:[#allocation5 + $0x854] ss:$48 sps:$4 sm:$0xff]  }
  0x9b   : > { %2254 = vmatpush1.bf16.msra.mxu0 %v6076_v56  ;;  %v6154_v47 = vld [vmem:[#allocation5 + $0x8b4] ss:$48 sps:$4 sm:$0xff]   ;;  %v6107_v56 = vld [vmem:[#allocation5 + $0x248] ss:$48 sps:$4 sm:$0xff]  }
  0x9c   : > { %2094 = vmatpush1.bf16.msra.mxu1 %v6007_v42  ;;  %2255 = vmatprep.subr.bf16.mxu0 %v6080_v58  ;;  %v6140_v42 = vld [vmem:[#allocation5 + $0x7f0] ss:$48 sps:$4 sm:$0xff]   ;;  %v6160_v51 = vld [vmem:[#allocation5 + $0x24] ss:$48 sps:$4 sm:$0xff]  }
  0x9d   : > { %2095 = vmatprep.subr.bf16.mxu1 %v6008_v44  ;;  %v6089_v44 = vld [vmem:[#allocation5 + $0x128] ss:$48 sps:$4 sm:$0xff]   ;;  %v6166_v55 = vld [vmem:[#allocation5 + $0x84] ss:$48 sps:$4 sm:$0xff]   ;;  %v6164_v58 = vld [vmem:[#allocation5 + $0x80] ss:$48 sps:$4 sm:$0xff]  }
  0x9f   : > { %2256 = vmatpush1.bf16.msra.mxu0 %v6082_v62  ;;  %v6121_v62 = vld [vmem:[#allocation5 + $0x30c] ss:$48 sps:$4 sm:$0xff]  }
  0xa0   : > { %2096 = vmatpush1.bf16.msra.mxu1 %v6010_v46  ;;  %2257 = vmatprep.subr.bf16.mxu0 %v6086_v63  ;;  %v6146_v46 = vld [vmem:[#allocation5 + $0x850] ss:$48 sps:$4 sm:$0xff]  }
  0xa1   : > { %2097 = vmatprep.subr.bf16.mxu1 %v6011_v48  ;;  %v6095_v48 = vld [vmem:[#allocation5 + $0x188] ss:$48 sps:$4 sm:$0xff]   ;;  %v6170_v63 = vld [vmem:[#allocation5 + $0xe0] ss:$48 sps:$4 sm:$0xff]  }
  0xa3   : > { %2258 = vmatpush1.bf16.msra.mxu0 %v6088_v3  ;;  %v6127_v3 = vld [vmem:[#allocation5 + $0x36c] ss:$48 sps:$4 sm:$0xff]  }
  0xa4   : > { %2098 = vmatpush1.bf16.msra.mxu1 %v6013_v50  ;;  %2259 = vmatprep.subr.bf16.mxu0 %v6092_v4  ;;  %v6152_v50 = vld [vmem:[#allocation5 + $0x8b0] ss:$48 sps:$4 sm:$0xff]  }
  0xa5   : > { %2099 = vmatprep.subr.bf16.mxu1 %v6017_v52  ;;  %v6101_v52 = vld [vmem:[#allocation5 + $0x1e8] ss:$48 sps:$4 sm:$0xff]   ;;  %v6176_v4 = vld [vmem:[#allocation5 + $0x140] ss:$48 sps:$4 sm:$0xff]  }
  0xa7   : > { %2260 = vmatpush1.bf16.msra.mxu0 %v6094_v7  ;;  %v6133_v7 = vld [vmem:[#allocation5 + $0x3cc] ss:$48 sps:$4 sm:$0xff]  }
  0xa8   : > { %2100 = vmatpush1.bf16.msra.mxu1 %v6019_v54  ;;  %2261 = vmatprep.subr.bf16.mxu0 %v6098_v8  ;;  %v6158_v54 = vld [vmem:[#allocation5 + $0x20] ss:$48 sps:$4 sm:$0xff]  }
  0xa9   : > { %2110 = vmatprep.subr.bf16.mxu1 %v6025_v57  ;;  %v6115_v57 = vld [vmem:[#allocation5 + $0x2ac] ss:$48 sps:$4 sm:$0xff]   ;;  %v6182_v8 = vld [vmem:[#allocation5 + $0x1a0] ss:$48 sps:$4 sm:$0xff]  }
  0xab   : > { %2102 = vmatmul.mubr.bf16.vlgmr.msra.gmra.mrb[0].mxu1 %v7174_v59  ;;  %2262 = vmatpush1.bf16.msra.mxu0 %v6100_v11  ;;  %v6139_v11 = vld [vmem:[#allocation5 + $0x42c] ss:$48 sps:$4 sm:$0xff]  }
  0xac   : > { %2111 = vmatpush1.bf16.msra.mxu1 %v6023_v60  ;;  %2142 = vmatprep.mubr.bf16.mxu1 %v6951_v1  ;;  %v6172_v60 = vld [vmem:[#allocation5 + $0xe4] ss:$48 sps:$4 sm:$0xff]  }
  0xad   : > { %2112 = vmatprep.subr.bf16.mxu1 %v6031_v61  ;;  %2263 = vmatprep.subr.bf16.mxu0 %v6104_v12  ;;  %v6113_v61 = vld [vmem:[#allocation5 + $0x2a8] ss:$48 sps:$4 sm:$0xff]   ;;  %v6188_v12 = vld [vmem:[#allocation5 + $0x200] ss:$48 sps:$4 sm:$0xff]  }
  0xaf   : > { %2264 = vmatpush1.bf16.msra.mxu0 %v6106_v15  ;;  %v6145_v15 = vld [vmem:[#allocation5 + $0x48c] ss:$48 sps:$4 sm:$0xff]  }
  0xb0   : > { %2113 = vmatpush1.bf16.msra.mxu1 %v6029_v0  ;;  %2274 = vmatprep.subr.bf16.mxu0 %v6112_v16  ;;  %v6178_v0 = vld [vmem:[#allocation5 + $0x144] ss:$48 sps:$4 sm:$0xff]   ;;  %v6194_v16 = vld [vmem:[#allocation5 + $0x260] ss:$48 sps:$4 sm:$0xff]  }
  0xb1   : > { %2114 = vmatprep.subr.bf16.mxu1 %v6037_v2  ;;  %v6119_v2 = vld [vmem:[#allocation5 + $0x308] ss:$48 sps:$4 sm:$0xff]  }
  0xb2   : > { %2266 = vmatmul.mubr.bf16.vlgmr.msra.gmra.mrb[0].mxu0 %v7174_v59 }
  0xb3   : > { %2275 = vmatpush1.bf16.msra.mxu0 %v6110_v19  ;;  %2306 = vmatprep.mubr.bf16.mxu0 %v6951_v1  ;;  %v6151_v19 = vld [vmem:[#allocation5 + $0x4ec] ss:$48 sps:$4 sm:$0xff]  }
  0xb4   : > { %2115 = vmatpush1.bf16.msra.mxu1 %v6035_v5  ;;  %2276 = vmatprep.subr.bf16.mxu0 %v6118_v20  ;;  %v6184_v5 = vld [vmem:[#allocation5 + $0x1a4] ss:$48 sps:$4 sm:$0xff]   ;;  %v6200_v20 = vld [vmem:[#allocation5 + $0x2c0] ss:$48 sps:$4 sm:$0xff]  }
  0xb5   : > { %2116 = vmatprep.subr.bf16.mxu1 %v6043_v6  ;;  %v6125_v6 = vld [vmem:[#allocation5 + $0x368] ss:$48 sps:$4 sm:$0xff]  }
  0xb7   : > { %2277 = vmatpush1.bf16.msra.mxu0 %v6116_v24  ;;  %v6157_v24 = vld [vmem:[#allocation5 + $0x54c] ss:$48 sps:$4 sm:$0xff]  }
  0xb8   : > { %2117 = vmatpush1.bf16.msra.mxu1 %v6041_v9  ;;  %2278 = vmatprep.subr.bf16.mxu0 %v6124_v25  ;;  %v6190_v9 = vld [vmem:[#allocation5 + $0x204] ss:$48 sps:$4 sm:$0xff]   ;;  %v6206_v25 = vld [vmem:[#allocation5 + $0x320] ss:$48 sps:$4 sm:$0xff]  }
  0xb9   : > { %2118 = vmatprep.subr.bf16.mxu1 %v6049_v10  ;;  %v6131_v10 = vld [vmem:[#allocation5 + $0x3c8] ss:$48 sps:$4 sm:$0xff]  }
  0xbb   : > { %2279 = vmatpush1.bf16.msra.mxu0 %v6122_v29  ;;  %v6212_v29 = vld [vmem:[#allocation5 + $0x380] ss:$48 sps:$4 sm:$0xff]  }
  0xbc   : > { %2119 = vmatpush1.bf16.msra.mxu1 %v6047_v13  ;;  %2280 = vmatprep.subr.bf16.mxu0 %v6130_v30  ;;  %v6196_v13 = vld [vmem:[#allocation5 + $0x264] ss:$48 sps:$4 sm:$0xff]  }
  0xbd   : > { %2120 = vmatprep.subr.bf16.mxu1 %v6055_v14  ;;  %v6137_v14 = vld [vmem:[#allocation5 + $0x428] ss:$48 sps:$4 sm:$0xff]   ;;  %v6220_v30 = vld [vmem:[#allocation5 + $0x3e4] ss:$48 sps:$4 sm:$0xff]  }
  0xbf   : > { %2281 = vmatpush1.bf16.msra.mxu0 %v6128_v34  ;;  %v6218_v34 = vld [vmem:[#allocation5 + $0x3e0] ss:$48 sps:$4 sm:$0xff]  }
  0xc0   : > { %2121 = vmatpush1.bf16.msra.mxu1 %v6053_v17  ;;  %2282 = vmatprep.subr.bf16.mxu0 %v6136_v35  ;;  %v6202_v17 = vld [vmem:[#allocation5 + $0x2c4] ss:$48 sps:$4 sm:$0xff]  }
  0xc1   : > { %2122 = vmatprep.subr.bf16.mxu1 %v6061_v18  ;;  %v6143_v18 = vld [vmem:[#allocation5 + $0x488] ss:$48 sps:$4 sm:$0xff]   ;;  %v6226_v35 = vld [vmem:[#allocation5 + $0x444] ss:$48 sps:$4 sm:$0xff]  }
  0xc3   : > { %2283 = vmatpush1.bf16.msra.mxu0 %v6134_v38  ;;  %v6224_v38 = vld [vmem:[#allocation5 + $0x440] ss:$48 sps:$4 sm:$0xff]  }
  0xc4   : > { %2123 = vmatpush1.bf16.msra.mxu1 %v6059_v22  ;;  %2284 = vmatprep.subr.bf16.mxu0 %v6142_v39  ;;  %v6208_v22 = vld [vmem:[#allocation5 + $0x324] ss:$48 sps:$4 sm:$0xff]  }
  0xc5   : > { %2124 = vmatprep.subr.bf16.mxu1 %v6067_v23  ;;  %v6149_v23 = vld [vmem:[#allocation5 + $0x4e8] ss:$48 sps:$4 sm:$0xff]   ;;  %v6232_v39 = vld [vmem:[#allocation5 + $0x4a4] ss:$48 sps:$4 sm:$0xff]  }
  0xc7   : > { %2285 = vmatpush1.bf16.msra.mxu0 %v6140_v42  ;;  %v6230_v42 = vld [vmem:[#allocation5 + $0x4a0] ss:$48 sps:$4 sm:$0xff]  }
  0xc8   : > { %2125 = vmatpush1.bf16.msra.mxu1 %v6065_v26  ;;  %2286 = vmatprep.subr.bf16.mxu0 %v6148_v43  ;;  %v6214_v26 = vld [vmem:[#allocation5 + $0x384] ss:$48 sps:$4 sm:$0xff]  }
  0xc9   : > { %2151 = vmatprep.subr.bf16.mxu1 %v6073_v28  ;;  %v6163_v28 = vld [vmem:[#allocation5 + $0x5ac] ss:$48 sps:$4 sm:$0xff]   ;;  %v6238_v43 = vld [vmem:[#allocation5 + $0x504] ss:$48 sps:$4 sm:$0xff]  }
  0xcb   : > { %2143 = vmatmul.mubr.bf16.vlgmr.msra.gmra.mrb[0].mxu1 %v7181_v31  ;;  %2287 = vmatpush1.bf16.msra.mxu0 %v6146_v46  ;;  %v6236_v46 = vld [vmem:[#allocation5 + $0x500] ss:$48 sps:$4 sm:$0xff]  }
  0xcc   : > { %2152 = vmatpush1.bf16.msra.mxu1 %v6071_v32  ;;  %2183 = vmatprep.mubr.bf16.mxu1 %v7169_v21  ;;  %v6161_v32 = vld [vmem:[#allocation5 + $0x5a8] ss:$48 sps:$4 sm:$0xff]  }
  0xcd   : > { %2153 = vmatprep.subr.bf16.mxu1 %v6079_v33  ;;  %2288 = vmatprep.subr.bf16.mxu0 %v6154_v47  ;;  %v6169_v33 = vld [vmem:[#allocation5 + $0x60c] ss:$48 sps:$4 sm:$0xff]   ;;  %v6244_v47 = vld [vmem:[#allocation5 + $0x564] ss:$48 sps:$4 sm:$0xff]  }
  0xcf   : > { %2289 = vmatpush1.bf16.msra.mxu0 %v6152_v50  ;;  %v6242_v50 = vld [vmem:[#allocation5 + $0x560] ss:$48 sps:$4 sm:$0xff]  }
  0xd0   : > { %2154 = vmatpush1.bf16.msra.mxu1 %v6077_v36  ;;  %2397 = vmatprep.subr.bf16.mxu0 %v6160_v51  ;;  %v6167_v36 = vld [vmem:[#allocation5 + $0x608] ss:$48 sps:$4 sm:$0xff]   ;;  %v6250_v51 = vld [vmem:[#allocation5 + $0x5c4] ss:$48 sps:$4 sm:$0xff]  }
  0xd1   : > { %2155 = vmatprep.subr.bf16.mxu1 %v6085_v37  ;;  %v6175_v37 = vld [vmem:[#allocation5 + $0x66c] ss:$48 sps:$4 sm:$0xff]  }
  0xd2   : > { %2307 = vmatmul.mubr.bf16.vlgmr.msra.gmra.mrb[0].mxu0 %v7181_v31 }
  0xd3   : > { %2398 = vmatpush1.bf16.msra.mxu0 %v6158_v54  ;;  %2429 = vmatprep.mubr.bf16.mxu0 %v7169_v21  ;;  %v6248_v54 = vld [vmem:[#allocation5 + $0x5c0] ss:$48 sps:$4 sm:$0xff]  }
  0xd4   : > { %2156 = vmatpush1.bf16.msra.mxu1 %v6083_v40  ;;  %2399 = vmatprep.subr.bf16.mxu0 %v6166_v55  ;;  %v6173_v40 = vld [vmem:[#allocation5 + $0x668] ss:$48 sps:$4 sm:$0xff]   ;;  %v6256_v55 = vld [vmem:[#allocation5 + $0x624] ss:$48 sps:$4 sm:$0xff]  }
  0xd5   : > { %2157 = vmatprep.subr.bf16.mxu1 %v6091_v41  ;;  %v6181_v41 = vld [vmem:[#allocation5 + $0x6cc] ss:$48 sps:$4 sm:$0xff]  }
  0xd7   : > { %2400 = vmatpush1.bf16.msra.mxu0 %v6164_v58  ;;  %v6254_v58 = vld [vmem:[#allocation5 + $0x620] ss:$48 sps:$4 sm:$0xff]  }
  0xd8   : > { %2158 = vmatpush1.bf16.msra.mxu1 %v6089_v44  ;;  %2401 = vmatprep.subr.bf16.mxu0 %v6172_v60  ;;  %v6179_v44 = vld [vmem:[#allocation5 + $0x6c8] ss:$48 sps:$4 sm:$0xff]   ;;  %v6262_v60 = vld [vmem:[#allocation5 + $0x684] ss:$48 sps:$4 sm:$0xff]  }
  0xd9   : > { %2159 = vmatprep.subr.bf16.mxu1 %v6097_v45  ;;  %v6187_v45 = vld [vmem:[#allocation5 + $0x72c] ss:$48 sps:$4 sm:$0xff]  }
  0xdb   : > { %2402 = vmatpush1.bf16.msra.mxu0 %v6170_v63  ;;  %v6260_v63 = vld [vmem:[#allocation5 + $0x680] ss:$48 sps:$4 sm:$0xff]  }
  0xdc   : > { %2160 = vmatpush1.bf16.msra.mxu1 %v6095_v48  ;;  %2403 = vmatprep.subr.bf16.mxu0 %v6178_v0  ;;  %v6185_v48 = vld [vmem:[#allocation5 + $0x728] ss:$48 sps:$4 sm:$0xff]   ;;  %v6268_v0 = vld [vmem:[#allocation5 + $0x6e4] ss:$48 sps:$4 sm:$0xff]  }
  0xdd   : > { %2161 = vmatprep.subr.bf16.mxu1 %v6103_v49  ;;  %v6193_v49 = vld [vmem:[#allocation5 + $0x78c] ss:$48 sps:$4 sm:$0xff]  }
  0xdf   : > { %2404 = vmatpush1.bf16.msra.mxu0 %v6176_v4  ;;  %v6266_v4 = vld [vmem:[#allocation5 + $0x6e0] ss:$48 sps:$4 sm:$0xff]  }
  0xe0   : > { %2162 = vmatpush1.bf16.msra.mxu1 %v6101_v52  ;;  %2405 = vmatprep.subr.bf16.mxu0 %v6184_v5  ;;  %v6191_v52 = vld [vmem:[#allocation5 + $0x788] ss:$48 sps:$4 sm:$0xff]   ;;  %v6274_v5 = vld [vmem:[#allocation5 + $0x744] ss:$48 sps:$4 sm:$0xff]  }
  0xe1   : > { %2163 = vmatprep.subr.bf16.mxu1 %v6109_v53  ;;  %v6199_v53 = vld [vmem:[#allocation5 + $0x7ec] ss:$48 sps:$4 sm:$0xff]  }
  0xe3   : > { %2406 = vmatpush1.bf16.msra.mxu0 %v6182_v8  ;;  %v6272_v8 = vld [vmem:[#allocation5 + $0x740] ss:$48 sps:$4 sm:$0xff]  }
  0xe4   : > { %2164 = vmatpush1.bf16.msra.mxu1 %v6107_v56  ;;  %2407 = vmatprep.subr.bf16.mxu0 %v6190_v9  ;;  %v6197_v56 = vld [vmem:[#allocation5 + $0x7e8] ss:$48 sps:$4 sm:$0xff]   ;;  %v6280_v9 = vld [vmem:[#allocation5 + $0x7a4] ss:$48 sps:$4 sm:$0xff]  }
  0xe5   : > { %2165 = vmatprep.subr.bf16.mxu1 %v6115_v57  ;;  %v6205_v57 = vld [vmem:[#allocation5 + $0x84c] ss:$48 sps:$4 sm:$0xff]  }
  0xe7   : > { %2408 = vmatpush1.bf16.msra.mxu0 %v6188_v12  ;;  %v6278_v12 = vld [vmem:[#allocation5 + $0x7a0] ss:$48 sps:$4 sm:$0xff]  }
  0xe8   : > { %2166 = vmatpush1.bf16.msra.mxu1 %v6113_v61  ;;  %2409 = vmatprep.subr.bf16.mxu0 %v6196_v13  ;;  %v6203_v61 = vld [vmem:[#allocation5 + $0x848] ss:$48 sps:$4 sm:$0xff]   ;;  %v6286_v13 = vld [vmem:[#allocation5 + $0x804] ss:$48 sps:$4 sm:$0xff]  }
  0xe9   : > { %2167 = vmatprep.subr.bf16.mxu1 %v6121_v62  ;;  %v6211_v62 = vld [vmem:[#allocation5 + $0x8ac] ss:$48 sps:$4 sm:$0xff]  }
  0xeb   : > { %2410 = vmatpush1.bf16.msra.mxu0 %v6194_v16  ;;  %v6284_v16 = vld [vmem:[#allocation5 + $0x800] ss:$48 sps:$4 sm:$0xff]  }
  0xec   : > { %2168 = vmatpush1.bf16.msra.mxu1 %v6119_v2  ;;  %2411 = vmatprep.subr.bf16.mxu0 %v6202_v17  ;;  %v6209_v2 = vld [vmem:[#allocation5 + $0x8a8] ss:$48 sps:$4 sm:$0xff]   ;;  %v6292_v17 = vld [vmem:[#allocation5 + $0x864] ss:$48 sps:$4 sm:$0xff]  }
  0xed   : > { %2169 = vmatprep.subr.bf16.mxu1 %v6127_v3  ;;  %v6217_v3 = vld [vmem:[#allocation5 + $0x1c] ss:$48 sps:$4 sm:$0xff]  }
  0xef   : > { %2412 = vmatpush1.bf16.msra.mxu0 %v6200_v20  ;;  %v6290_v20 = vld [vmem:[#allocation5 + $0x860] ss:$48 sps:$4 sm:$0xff]  }
  0xf0   : > { %2170 = vmatpush1.bf16.msra.mxu1 %v6125_v6  ;;  %2413 = vmatprep.subr.bf16.mxu0 %v6208_v22  ;;  %v6215_v6 = vld [vmem:[#allocation5 + $0x18] ss:$48 sps:$4 sm:$0xff]   ;;  %v6298_v22 = vld [vmem:[#allocation5 + $0x8c4] ss:$48 sps:$4 sm:$0xff]  }
  0xf1   : > { %2171 = vmatprep.subr.bf16.mxu1 %v6133_v7  ;;  %v6223_v7 = vld [vmem:[#allocation5 + $0x7c] ss:$48 sps:$4 sm:$0xff]  }
  0xf3   : > { %2414 = vmatpush1.bf16.msra.mxu0 %v6206_v25  ;;  %v6296_v25 = vld [vmem:[#allocation5 + $0x8c0] ss:$48 sps:$4 sm:$0xff]  }
  0xf4   : > { %2172 = vmatpush1.bf16.msra.mxu1 %v6131_v10  ;;  %2415 = vmatprep.subr.bf16.mxu0 %v6214_v26  ;;  %v6221_v10 = vld [vmem:[#allocation5 + $0x78] ss:$48 sps:$4 sm:$0xff]   ;;  %v6307_v26 = vld [vmem:[#allocation7 + $0x4] ss:$12 sps:$4 sm:$0xff]  }
  0xf5   : > { %2173 = vmatprep.subr.bf16.mxu1 %v6139_v11  ;;  %v6229_v11 = vld [vmem:[#allocation5 + $0xdc] ss:$48 sps:$4 sm:$0xff]  }
  0xf7   : > { %2416 = vmatpush1.bf16.msra.mxu0 %v6212_v29  ;;  %v6305_v29 = vld [vmem:[#allocation7] ss:$12 sps:$4 sm:$0xff]  }
  0xf8   : > { %2174 = vmatpush1.bf16.msra.mxu1 %v6137_v14  ;;  %2417 = vmatprep.subr.bf16.mxu0 %v6220_v30  ;;  %v6227_v14 = vld [vmem:[#allocation5 + $0xd8] ss:$48 sps:$4 sm:$0xff]  }
  0xf9   : > { %2175 = vmatprep.subr.bf16.mxu1 %v6145_v15  ;;  %v6235_v15 = vld [vmem:[#allocation5 + $0x13c] ss:$48 sps:$4 sm:$0xff]  }
  0xfa   : > { %v6313_v30 = vld [vmem:[#allocation7 + $0x1c] ss:$12 sps:$4 sm:$0xff]  }
  0xfb   : > { %2418 = vmatpush1.bf16.msra.mxu0 %v6218_v34  ;;  %v6311_v34 = vld [vmem:[#allocation7 + $0x18] ss:$12 sps:$4 sm:$0xff]  }
  0xfc   : > { %2176 = vmatpush1.bf16.msra.mxu1 %v6143_v18  ;;  %2419 = vmatprep.subr.bf16.mxu0 %v6226_v35  ;;  %v6233_v18 = vld [vmem:[#allocation5 + $0x138] ss:$48 sps:$4 sm:$0xff]   ;;  %v6319_v35 = vld [vmem:[#allocation7 + $0x34] ss:$12 sps:$4 sm:$0xff]  }
  0xfd   : > { %2177 = vmatprep.subr.bf16.mxu1 %v6151_v19  ;;  %v6241_v19 = vld [vmem:[#allocation5 + $0x19c] ss:$48 sps:$4 sm:$0xff]  }
  0xff   : > { %2420 = vmatpush1.bf16.msra.mxu0 %v6224_v38  ;;  %v6317_v38 = vld [vmem:[#allocation7 + $0x30] ss:$12 sps:$4 sm:$0xff]  }
 0x100   : > { %2178 = vmatpush1.bf16.msra.mxu1 %v6149_v23  ;;  %2421 = vmatprep.subr.bf16.mxu0 %v6232_v39  ;;  %v6239_v23 = vld [vmem:[#allocation5 + $0x198] ss:$48 sps:$4 sm:$0xff]  }
 0x101   : > { %2179 = vmatprep.subr.bf16.mxu1 %v6157_v24  ;;  %v6247_v24 = vld [vmem:[#allocation5 + $0x1fc] ss:$48 sps:$4 sm:$0xff]  }
 0x102   : > { %v6325_v39 = vld [vmem:[#allocation7 + $0x4c] ss:$12 sps:$4 sm:$0xff]  }
 0x103   : > { %2422 = vmatpush1.bf16.msra.mxu0 %v6230_v42  ;;  %v6323_v42 = vld [vmem:[#allocation7 + $0x48] ss:$12 sps:$4 sm:$0xff]  }
 0x104   : > { %2180 = vmatpush1.bf16.msra.mxu1 %v6155_v27  ;;  %2423 = vmatprep.subr.bf16.mxu0 %v6238_v43  ;;  %v6245_v27 = vld [vmem:[#allocation5 + $0x1f8] ss:$48 sps:$4 sm:$0xff]   ;;  %v6331_v43 = vld [vmem:[#allocation7 + $0x64] ss:$12 sps:$4 sm:$0xff]  }
 0x105   : > { %2181 = vmatprep.subr.bf16.mxu1 %v6163_v28  ;;  %v6253_v28 = vld [vmem:[#allocation5 + $0x25c] ss:$48 sps:$4 sm:$0xff]  }
 0x107   : > { %2424 = vmatpush1.bf16.msra.mxu0 %v6236_v46  ;;  %v6329_v46 = vld [vmem:[#allocation7 + $0x60] ss:$12 sps:$4 sm:$0xff]  }
 0x108   : > { %2182 = vmatpush1.bf16.msra.mxu1 %v6161_v32  ;;  %2425 = vmatprep.subr.bf16.mxu0 %v6244_v47  ;;  %v6251_v32 = vld [vmem:[#allocation5 + $0x258] ss:$48 sps:$4 sm:$0xff]  }
 0x109   : > { %2192 = vmatprep.subr.bf16.mxu1 %v6169_v33  ;;  %v6259_v33 = vld [vmem:[#allocation5 + $0x2bc] ss:$48 sps:$4 sm:$0xff]  }
 0x10a   : > { %v6337_v47 = vld [vmem:[#allocation7 + $0x7c] ss:$12 sps:$4 sm:$0xff]  }
 0x10b   : > { %2184 = vmatmul.mubr.bf16.vlgmr.msra.gmra.mrb[4].mxu1 %v7174_v59  ;;  %2426 = vmatpush1.bf16.msra.mxu0 %v6242_v50  ;;  %v6335_v50 = vld [vmem:[#allocation7 + $0x78] ss:$12 sps:$4 sm:$0xff]  }
 0x10c   : > { %2193 = vmatpush1.bf16.msra.mxu1 %v6167_v36  ;;  %2224 = vmatprep.mubr.bf16.mxu1 %v6951_v1  ;;  %v6257_v36 = vld [vmem:[#allocation5 + $0x2b8] ss:$48 sps:$4 sm:$0xff]  }
 0x10d   : > { %2194 = vmatprep.subr.bf16.mxu1 %v6175_v37  ;;  %2427 = vmatprep.subr.bf16.mxu0 %v6250_v51  ;;  %v6265_v37 = vld [vmem:[#allocation5 + $0x31c] ss:$48 sps:$4 sm:$0xff]   ;;  %v6343_v51 = vld [vmem:[#allocation7 + $0x94] ss:$12 sps:$4 sm:$0xff]  }
 0x10f   : > { %2428 = vmatpush1.bf16.msra.mxu0 %v6248_v54  ;;  %v6341_v54 = vld [vmem:[#allocation7 + $0x90] ss:$12 sps:$4 sm:$0xff]  }
 0x110   : > { %2195 = vmatpush1.bf16.msra.mxu1 %v6173_v40  ;;  %2438 = vmatprep.subr.bf16.mxu0 %v6256_v55  ;;  %v6263_v40 = vld [vmem:[#allocation5 + $0x318] ss:$48 sps:$4 sm:$0xff]  }
 0x111   : > { %2196 = vmatprep.subr.bf16.mxu1 %v6181_v41  ;;  %v6271_v41 = vld [vmem:[#allocation5 + $0x37c] ss:$48 sps:$4 sm:$0xff]  }
 0x112   : > { %2430 = vmatmul.mubr.bf16.vlgmr.msra.gmra.mrb[4].mxu0 %v7174_v59  ;;  %v6349_v55 = vld [vmem:[#allocation7 + $0xac] ss:$12 sps:$4 sm:$0xff]  }
 0x113   : > { %2439 = vmatpush1.bf16.msra.mxu0 %v6254_v58  ;;  %2470 = vmatprep.mubr.bf16.mxu0 %v6951_v1  ;;  %v6347_v58 = vld [vmem:[#allocation7 + $0xa8] ss:$12 sps:$4 sm:$0xff]  }
 0x114   : > { %2197 = vmatpush1.bf16.msra.mxu1 %v6179_v44  ;;  %2440 = vmatprep.subr.bf16.mxu0 %v6262_v60  ;;  %v6269_v44 = vld [vmem:[#allocation5 + $0x378] ss:$48 sps:$4 sm:$0xff]   ;;  %v6355_v60 = vld [vmem:[#allocation7 + $0xc4] ss:$12 sps:$4 sm:$0xff]  }
 0x115   : > { %2198 = vmatprep.subr.bf16.mxu1 %v6187_v45  ;;  %v6277_v45 = vld [vmem:[#allocation5 + $0x3dc] ss:$48 sps:$4 sm:$0xff]  }
 0x117   : > { %2441 = vmatpush1.bf16.msra.mxu0 %v6260_v63  ;;  %v6353_v63 = vld [vmem:[#allocation7 + $0xc0] ss:$12 sps:$4 sm:$0xff]  }
 0x118   : > { %2199 = vmatpush1.bf16.msra.mxu1 %v6185_v48  ;;  %2442 = vmatprep.subr.bf16.mxu0 %v6268_v0  ;;  %v6275_v48 = vld [vmem:[#allocation5 + $0x3d8] ss:$48 sps:$4 sm:$0xff]  }
 0x119   : > { %2200 = vmatprep.subr.bf16.mxu1 %v6193_v49  ;;  %v6283_v49 = vld [vmem:[#allocation5 + $0x43c] ss:$48 sps:$4 sm:$0xff]  }
 0x11a   : > { %v6361_v0 = vld [vmem:[#allocation7 + $0xdc] ss:$12 sps:$4 sm:$0xff]  }
 0x11b   : > { %2443 = vmatpush1.bf16.msra.mxu0 %v6266_v4  ;;  %v6359_v4 = vld [vmem:[#allocation7 + $0xd8] ss:$12 sps:$4 sm:$0xff]  }
 0x11c   : > { %2201 = vmatpush1.bf16.msra.mxu1 %v6191_v52  ;;  %2444 = vmatprep.subr.bf16.mxu0 %v6274_v5  ;;  %v6281_v52 = vld [vmem:[#allocation5 + $0x438] ss:$48 sps:$4 sm:$0xff]   ;;  %v6367_v5 = vld [vmem:[#allocation7 + $0xf4] ss:$12 sps:$4 sm:$0xff]  }
 0x11d   : > { %2202 = vmatprep.subr.bf16.mxu1 %v6199_v53  ;;  %v6289_v53 = vld [vmem:[#allocation5 + $0x49c] ss:$48 sps:$4 sm:$0xff]  }
 0x11f   : > { %2445 = vmatpush1.bf16.msra.mxu0 %v6272_v8  ;;  %v6365_v8 = vld [vmem:[#allocation7 + $0xf0] ss:$12 sps:$4 sm:$0xff]  }
 0x120   : > { %2203 = vmatpush1.bf16.msra.mxu1 %v6197_v56  ;;  %2446 = vmatprep.subr.bf16.mxu0 %v6280_v9  ;;  %v6287_v56 = vld [vmem:[#allocation5 + $0x498] ss:$48 sps:$4 sm:$0xff]  }
 0x121   : > { %2204 = vmatprep.subr.bf16.mxu1 %v6205_v57  ;;  %v6295_v57 = vld [vmem:[#allocation5 + $0x4fc] ss:$48 sps:$4 sm:$0xff]  }
 0x122   : > { %v6373_v9 = vld [vmem:[#allocation7 + $0x10c] ss:$12 sps:$4 sm:$0xff]  }
 0x123   : > { %2447 = vmatpush1.bf16.msra.mxu0 %v6278_v12  ;;  %v6371_v12 = vld [vmem:[#allocation7 + $0x108] ss:$12 sps:$4 sm:$0xff]  }
 0x124   : > { %2205 = vmatpush1.bf16.msra.mxu1 %v6203_v61  ;;  %2448 = vmatprep.subr.bf16.mxu0 %v6286_v13  ;;  %v6293_v61 = vld [vmem:[#allocation5 + $0x4f8] ss:$48 sps:$4 sm:$0xff]   ;;  %v6379_v13 = vld [vmem:[#allocation7 + $0x124] ss:$12 sps:$4 sm:$0xff]  }
 0x125   : > { %2206 = vmatprep.subr.bf16.mxu1 %v6211_v62  ;;  %v6301_v62 = vld [vmem:[#allocation5 + $0x55c] ss:$48 sps:$4 sm:$0xff]  }
 0x127   : > { %2449 = vmatpush1.bf16.msra.mxu0 %v6284_v16  ;;  %v6377_v16 = vld [vmem:[#allocation7 + $0x120] ss:$12 sps:$4 sm:$0xff]  }
 0x128   : > { %2207 = vmatpush1.bf16.msra.mxu1 %v6209_v2  ;;  %2450 = vmatprep.subr.bf16.mxu0 %v6292_v17  ;;  %v6299_v2 = vld [vmem:[#allocation5 + $0x558] ss:$48 sps:$4 sm:$0xff]  }
 0x129   : > { %2315 = vmatprep.subr.bf16.mxu1 %v6217_v3  ;;  %v6304_v3 = vld [vmem:[#allocation5 + $0x5bc] ss:$48 sps:$4 sm:$0xff]  }
 0x12a   : > { %v6385_v17 = vld [vmem:[#allocation7 + $0x13c] ss:$12 sps:$4 sm:$0xff]  }
 0x12b   : > { %2225 = vmatmul.mubr.bf16.vlgmr.msra.gmra.mrb[4].mxu1 %v7181_v31  ;;  %2451 = vmatpush1.bf16.msra.mxu0 %v6290_v20  ;;  %v6383_v20 = vld [vmem:[#allocation7 + $0x138] ss:$12 sps:$4 sm:$0xff]  }
 0x12c   : > { %2316 = vmatpush1.bf16.msra.mxu1 %v6215_v6  ;;  %2347 = vmatprep.mubr.bf16.mxu1 %v7169_v21  ;;  %v6302_v6 = vld [vmem:[#allocation5 + $0x5b8] ss:$48 sps:$4 sm:$0xff]  }
 0x12d   : > { %2317 = vmatprep.subr.bf16.mxu1 %v6223_v7  ;;  %2452 = vmatprep.subr.bf16.mxu0 %v6298_v22  ;;  %v6310_v7 = vld [vmem:[#allocation5 + $0x61c] ss:$48 sps:$4 sm:$0xff]   ;;  %v6391_v22 = vld [vmem:[#allocation7 + $0x154] ss:$12 sps:$4 sm:$0xff]  }
 0x12f   : > { %2453 = vmatpush1.bf16.msra.mxu0 %v6296_v25  ;;  %v6389_v25 = vld [vmem:[#allocation7 + $0x150] ss:$12 sps:$4 sm:$0xff]  }
 0x130   : > { %2318 = vmatpush1.bf16.msra.mxu1 %v6221_v10  ;;  %4522 = vmatprep.subr.bf16.mxu0 %v6307_v26  ;;  %v6308_v10 = vld [vmem:[#allocation5 + $0x618] ss:$48 sps:$4 sm:$0xff]  }
 0x131   : > { %2319 = vmatprep.subr.bf16.mxu1 %v6229_v11  ;;  %v6316_v11 = vld [vmem:[#allocation5 + $0x67c] ss:$48 sps:$4 sm:$0xff]  }
 0x132   : > { %2471 = vmatmul.mubr.bf16.vlgmr.msra.gmra.mrb[4].mxu0 %v7181_v31  ;;  %v6397_v26 = vld [vmem:[#allocation7 + $0x16c] ss:$12 sps:$4 sm:$0xff]  }
 0x133   : > { %4523 = vmatpush1.bf16.msra.mxu0 %v6305_v29  ;;  %v6395_v29 = vld [vmem:[#allocation7 + $0x168] ss:$12 sps:$4 sm:$0xff]  }
 0x134   : > { %2320 = vmatpush1.bf16.msra.mxu1 %v6227_v14  ;;  %4524 = vmatprep.subr.bf16.mxu0 %v6313_v30  ;;  %v6314_v14 = vld [vmem:[#allocation5 + $0x678] ss:$48 sps:$4 sm:$0xff]   ;;  %v6424_v30 = vld [vmem:[#allocation7 + $0x184] ss:$12 sps:$4 sm:$0xff]  }
 0x135   : > { %2321 = vmatprep.subr.bf16.mxu1 %v6235_v15  ;;  %v6322_v15 = vld [vmem:[#allocation5 + $0x6dc] ss:$48 sps:$4 sm:$0xff]  }
 0x137   : > { %4525 = vmatpush1.bf16.msra.mxu0 %v6311_v34  ;;  %v6344_v34 = vld [vmem:[#allocation5 + $0x858] ss:$48 sps:$4 sm:$0xff]  }
 0x138   : > { %2322 = vmatpush1.bf16.msra.mxu1 %v6233_v18  ;;  %4526 = vmatprep.subr.bf16.mxu0 %v6319_v35  ;;  %v6320_v18 = vld [vmem:[#allocation5 + $0x6d8] ss:$48 sps:$4 sm:$0xff]   ;;  %v6352_v35 = vld [vmem:[#allocation5 + $0x8bc] ss:$48 sps:$4 sm:$0xff]  }
 0x139   : > { %2323 = vmatprep.subr.bf16.mxu1 %v6241_v19  ;;  %v6328_v19 = vld [vmem:[#allocation5 + $0x73c] ss:$48 sps:$4 sm:$0xff]  }
 0x13b   : > { %4527 = vmatpush1.bf16.msra.mxu0 %v6317_v38  ;;  %v6356_v38 = vld [vmem:[#allocation5 + $0x28] ss:$48 sps:$4 sm:$0xff]  }
 0x13c   : > { %2324 = vmatpush1.bf16.msra.mxu1 %v6239_v23  ;;  %4528 = vmatprep.subr.bf16.mxu0 %v6325_v39  ;;  %v6326_v23 = vld [vmem:[#allocation5 + $0x738] ss:$48 sps:$4 sm:$0xff]   ;;  %v6364_v39 = vld [vmem:[#allocation5 + $0x8c] ss:$48 sps:$4 sm:$0xff]  }
 0x13d   : > { %2325 = vmatprep.subr.bf16.mxu1 %v6247_v24  ;;  %v6334_v24 = vld [vmem:[#allocation5 + $0x79c] ss:$48 sps:$4 sm:$0xff]  }
 0x13f   : > { %4529 = vmatpush1.bf16.msra.mxu0 %v6323_v42  ;;  %v569_v42 = vlaneseq }
 0x140   : > { %2326 = vmatpush1.bf16.msra.mxu1 %v6245_v27  ;;  %4530 = vmatprep.subr.bf16.mxu0 %v6331_v43  ;;  %v6332_v27 = vld [vmem:[#allocation5 + $0x798] ss:$48 sps:$4 sm:$0xff]  }
 0x141   : > { %2327 = vmatprep.subr.bf16.mxu1 %v6253_v28  ;;  %v6340_v28 = vld [vmem:[#allocation5 + $0x7fc] ss:$48 sps:$4 sm:$0xff]   ;;  %v6368_v43 = vld [vmem:[#allocation5 + $0xe8] ss:$48 sps:$4 sm:$0xff]  }
 0x143   : > { %4531 = vmatpush1.bf16.msra.mxu0 %v6329_v46  ;;  %v6374_v46 = vld [vmem:[#allocation5 + $0x148] ss:$48 sps:$4 sm:$0xff]  }
 0x144   : > { %2328 = vmatpush1.bf16.msra.mxu1 %v6251_v32  ;;  %4532 = vmatprep.subr.bf16.mxu0 %v6337_v47  ;;  %v6338_v32 = vld [vmem:[#allocation5 + $0x7f8] ss:$48 sps:$4 sm:$0xff]   ;;  %v6382_v47 = vld [vmem:[#allocation5 + $0x1ac] ss:$48 sps:$4 sm:$0xff]  }
 0x145   : > { %2329 = vmatprep.subr.bf16.mxu1 %v6259_v33  ;;  %v6346_v33 = vld [vmem:[#allocation5 + $0x85c] ss:$48 sps:$4 sm:$0xff]  }
 0x147   : > { %4533 = vmatpush1.bf16.msra.mxu0 %v6335_v50 }
 0x148   : > { %2330 = vmatpush1.bf16.msra.mxu1 %v6257_v36  ;;  %4534 = vmatprep.subr.bf16.mxu0 %v6343_v51  ;;  %v6350_v36 = vld [vmem:[#allocation5 + $0x8b8] ss:$48 sps:$4 sm:$0xff]   ;;  %v6388_v51 = vld [vmem:[#allocation5 + $0x20c] ss:$48 sps:$4 sm:$0xff]  }
 0x149   : > { %2331 = vmatprep.subr.bf16.mxu1 %v6265_v37  ;;  %v6358_v37 = vld [vmem:[#allocation5 + $0x2c] ss:$48 sps:$4 sm:$0xff]  }
 0x14b   : > { %4535 = vmatpush1.bf16.msra.mxu0 %v6341_v54 }
 0x14c   : > { %2332 = vmatpush1.bf16.msra.mxu1 %v6263_v40  ;;  %4536 = vmatprep.subr.bf16.mxu0 %v6349_v55  ;;  %v6362_v40 = vld [vmem:[#allocation5 + $0x88] ss:$48 sps:$4 sm:$0xff]   ;;  %v6394_v55 = vld [vmem:[#allocation5 + $0x26c] ss:$48 sps:$4 sm:$0xff]  }
 0x14d   : > { %2333 = vmatprep.subr.bf16.mxu1 %v6271_v41  ;;  %v6370_v41 = vld [vmem:[#allocation5 + $0xec] ss:$48 sps:$4 sm:$0xff]  }
 0x14f   : > { %4537 = vmatpush1.bf16.msra.mxu0 %v6347_v58 }
 0x150   : > { %2334 = vmatpush1.bf16.msra.mxu1 %v6269_v44  ;;  %4538 = vmatprep.subr.bf16.mxu0 %v6355_v60  ;;  %v6376_v44 = vld [vmem:[#allocation5 + $0x14c] ss:$48 sps:$4 sm:$0xff]   ;;  %v6392_v60 = vld [vmem:[#allocation5 + $0x268] ss:$48 sps:$4 sm:$0xff]  }
 0x151   : > { %2335 = vmatprep.subr.bf16.mxu1 %v6277_v45  ;;  %v7198_v45 = vshrl.u32 %v569_v42, 7  ;;  %v6427_v42 = vld [vmem:[#allocation5 + $0x5cc] ss:$48 sps:$4 sm:$0xff]  }
 0x153   : > { %4539 = vmatpush1.bf16.msra.mxu0 %v6353_v63  ;;  %v7209_v50 = vsub.s32 1, %v7198_v45 }
 0x154   : > { %2336 = vmatpush1.bf16.msra.mxu1 %v6275_v48  ;;  %4540 = vmatprep.subr.bf16.mxu0 %v6361_v0  ;;  %v6380_v48 = vld [vmem:[#allocation5 + $0x1a8] ss:$48 sps:$4 sm:$0xff]  }
 0x155   : > { %2337 = vmatprep.subr.bf16.mxu1 %v6283_v49  ;;  %v7203_v49 = vld [vmem:[%s7352_s2] sm:$0xff] }
 0x156   : > { %v576_v54 = vrot.slane %v7203_v49, %v7209_v50 }
 0x157   : > { %4541 = vmatpush1.bf16.msra.mxu0 %v6359_v4  ;;  %v6398_v4 = vld [vmem:[#allocation5 + $0x2c8] ss:$48 sps:$4 sm:$0xff]  }
 0x158   : > { %2338 = vmatpush1.bf16.msra.mxu1 %v6281_v52  ;;  %4542 = vmatprep.subr.bf16.mxu0 %v6367_v5  ;;  %v6422_v5 = vld [vmem:[#allocation7 + $0x180] ss:$12 sps:$4 sm:$0xff]  }
 0x159   : > { %2339 = vmatprep.subr.bf16.mxu1 %v6289_v53  ;;  %v6386_v53 = vld [vmem:[#allocation5 + $0x208] ss:$48 sps:$4 sm:$0xff]  }
 0x15b   : > { %4543 = vmatpush1.bf16.msra.mxu0 %v6365_v8  ;;  %v6403_v8 = vld [vmem:[#allocation5 + $0x32c] ss:$48 sps:$4 sm:$0xff]  }
 0x15c   : > { %2340 = vmatpush1.bf16.msra.mxu1 %v6287_v56  ;;  %4544 = vmatprep.subr.bf16.mxu0 %v6373_v9  ;;  %v6430_v9 = vld [vmem:[#allocation7 + $0x19c] ss:$12 sps:$4 sm:$0xff]  }
 0x15d   : > { %2341 = vmatprep.subr.bf16.mxu1 %v6295_v57 }
 0x15f   : > { %4545 = vmatpush1.bf16.msra.mxu0 %v6371_v12  ;;  %v6406_v12 = vld [vmem:[#allocation5 + $0x38c] ss:$48 sps:$4 sm:$0xff]  }
 0x160   : > { %2342 = vmatpush1.bf16.msra.mxu1 %v6293_v61  ;;  %4546 = vmatprep.subr.bf16.mxu0 %v6379_v13  ;;  %v6436_v13 = vld [vmem:[#allocation7 + $0x1b4] ss:$12 sps:$4 sm:$0xff]  }
 0x161   : > { %2343 = vmatprep.subr.bf16.mxu1 %v6301_v62 }
 0x163   : > { %4547 = vmatpush1.bf16.msra.mxu0 %v6377_v16  ;;  %v6409_v16 = vld [vmem:[#allocation5 + $0x3ec] ss:$48 sps:$4 sm:$0xff]  }
 0x164   : > { %2344 = vmatpush1.bf16.msra.mxu1 %v6299_v2  ;;  %4548 = vmatprep.subr.bf16.mxu0 %v6385_v17  ;;  %v6400_v2 = vld [vmem:[#allocation5 + $0x2cc] ss:$48 sps:$4 sm:$0xff]  }
 0x165   : > { %2345 = vmatprep.subr.bf16.mxu1 %v6304_v3  ;;  %v6442_v17 = vld [vmem:[#allocation7 + $0x1cc] ss:$12 sps:$4 sm:$0xff]  }
 0x167   : > { %4549 = vmatpush1.bf16.msra.mxu0 %v6383_v20  ;;  %v6412_v20 = vld [vmem:[#allocation5 + $0x44c] ss:$48 sps:$4 sm:$0xff]  }
 0x168   : > { %2346 = vmatpush1.bf16.msra.mxu1 %v6302_v6  ;;  %4550 = vmatprep.subr.bf16.mxu0 %v6391_v22  ;;  %v6448_v22 = vld [vmem:[#allocation7 + $0x1e4] ss:$12 sps:$4 sm:$0xff]  }
 0x169   : > { %2356 = vmatprep.subr.bf16.mxu1 %v6310_v7 }
 0x16b   : > { %2348 = vmatmul.mubr.bf16.vlgmr.msra.gmra.mrb[8].mxu1 %v7174_v59  ;;  %4551 = vmatpush1.bf16.msra.mxu0 %v6389_v25 }
 0x16c   : > { %2357 = vmatpush1.bf16.msra.mxu1 %v6308_v10  ;;  %2388 = vmatprep.mubr.bf16.mxu1 %v6951_v1  ;;  %v6401_v10 = vld [vmem:[#allocation5 + $0x328] ss:$48 sps:$4 sm:$0xff]  }
 0x16d   : > { %2358 = vmatprep.subr.bf16.mxu1 %v6316_v11  ;;  %4552 = vmatprep.subr.bf16.mxu0 %v6397_v26  ;;  %v6428_v11 = vld [vmem:[#allocation7 + $0x198] ss:$12 sps:$4 sm:$0xff]  }
 0x16f   : > { %4553 = vmatpush1.bf16.msra.mxu0 %v6395_v29  ;;  %v6454_v29 = vld [vmem:[#allocation7 + $0x1fc] ss:$12 sps:$4 sm:$0xff]  }
 0x170   : > { %2359 = vmatpush1.bf16.msra.mxu1 %v6314_v14  ;;  %4563 = vmatprep.subr.bf16.mxu0 %v6424_v30  ;;  %v6404_v14 = vld [vmem:[#allocation5 + $0x388] ss:$48 sps:$4 sm:$0xff]  }
 0x171   : > { %2360 = vmatprep.subr.bf16.mxu1 %v6322_v15  ;;  %v6434_v15 = vld [vmem:[#allocation7 + $0x1b0] ss:$12 sps:$4 sm:$0xff]   ;;  %v6413_v30 = vld [vmem:[#allocation5 + $0x4a8] ss:$48 sps:$4 sm:$0xff]  }
 0x174   : > { %2361 = vmatpush1.bf16.msra.mxu1 %v6320_v18  ;;  %v6407_v18 = vld [vmem:[#allocation5 + $0x3e8] ss:$48 sps:$4 sm:$0xff]  }
 0x175   : > { %2362 = vmatprep.subr.bf16.mxu1 %v6328_v19  ;;  %v6440_v19 = vld [vmem:[#allocation7 + $0x1c8] ss:$12 sps:$4 sm:$0xff]  }
 0x178   : > { %2363 = vmatpush1.bf16.msra.mxu1 %v6326_v23  ;;  %v6410_v23 = vld [vmem:[#allocation5 + $0x448] ss:$48 sps:$4 sm:$0xff]  }
 0x179   : > { %2364 = vmatprep.subr.bf16.mxu1 %v6334_v24  ;;  %v6446_v24 = vld [vmem:[#allocation7 + $0x1e0] ss:$12 sps:$4 sm:$0xff]  }
 0x17c   : > { %2365 = vmatpush1.bf16.msra.mxu1 %v6332_v27  ;;  %v6415_v27 = vld [vmem:[#allocation5 + $0x4ac] ss:$48 sps:$4 sm:$0xff]  }
 0x17d   : > { %2366 = vmatprep.subr.bf16.mxu1 %v6340_v28 }
 0x180   : > { %2367 = vmatpush1.bf16.msra.mxu1 %v6338_v32 }
 0x181   : > { %2368 = vmatprep.subr.bf16.mxu1 %v6346_v33  ;;  %v6452_v33 = vld [vmem:[#allocation7 + $0x1f8] ss:$12 sps:$4 sm:$0xff]  }
 0x184   : > { %2369 = vmatpush1.bf16.msra.mxu1 %v6344_v34  ;;  %v6418_v34 = vld [vmem:[#allocation5 + $0x50c] ss:$48 sps:$4 sm:$0xff]  }
 0x185   : > { %2370 = vmatprep.subr.bf16.mxu1 %v6352_v35  ;;  %v6460_v35 = vld [vmem:[#allocation7 + $0x214] ss:$12 sps:$4 sm:$0xff]  }
 0x188   : > { %2371 = vmatpush1.bf16.msra.mxu1 %v6350_v36  ;;  %v6416_v36 = vld [vmem:[#allocation5 + $0x508] ss:$48 sps:$4 sm:$0xff]  }
 0x189   : > { %2479 = vmatprep.subr.bf16.mxu1 %v6358_v37  ;;  %v6458_v37 = vld [vmem:[#allocation7 + $0x210] ss:$12 sps:$4 sm:$0xff]  }
 0x18b   : > { %2389 = vmatmul.mubr.bf16.vlgmr.msra.gmra.mrb[8].mxu1 %v7181_v31 }
 0x18c   : > { %2480 = vmatpush1.bf16.msra.mxu1 %v6356_v38  ;;  %2511 = vmatprep.mubr.bf16.mxu1 %v7169_v21  ;;  %v7206_v21 = vsub.s32 0, %v7198_v45  ;;  %v6421_v38 = vld [vmem:[#allocation5 + $0x56c] ss:$48 sps:$4 sm:$0xff]  }
 0x18d   : > { %2481 = vmatprep.subr.bf16.mxu1 %v6364_v39  ;;  %v6466_v39 = vld [vmem:[#allocation7 + $0x22c] ss:$12 sps:$4 sm:$0xff]  }
 0x18e   : > { %v572_v52 = vrot.slane %v7203_v49, %v7206_v21 }
 0x190   : > { %2482 = vmatpush1.bf16.msra.mxu1 %v6362_v40  ;;  %v6419_v40 = vld [vmem:[#allocation5 + $0x568] ss:$48 sps:$4 sm:$0xff]  }
 0x191   : > { %2483 = vmatprep.subr.bf16.mxu1 %v6370_v41  ;;  %v6464_v41 = vld [vmem:[#allocation7 + $0x228] ss:$12 sps:$4 sm:$0xff]  }
 0x194   : > { %2484 = vmatpush1.bf16.msra.mxu1 %v6368_v43  ;;  %v6472_v43 = vld [vmem:[#allocation7 + $0x244] ss:$12 sps:$4 sm:$0xff]  }
 0x195   : > { %2485 = vmatprep.subr.bf16.mxu1 %v6376_v44  ;;  %v6425_v44 = vld [vmem:[#allocation5 + $0x5c8] ss:$48 sps:$4 sm:$0xff]  }
 0x198   : > { %2486 = vmatpush1.bf16.msra.mxu1 %v6374_v46  ;;  %v6433_v46 = vld [vmem:[#allocation5 + $0x62c] ss:$48 sps:$4 sm:$0xff]  }
 0x199   : > { %2487 = vmatprep.subr.bf16.mxu1 %v6382_v47  ;;  %v6470_v47 = vld [vmem:[#allocation7 + $0x240] ss:$12 sps:$4 sm:$0xff]  }
 0x19c   : > { %2488 = vmatpush1.bf16.msra.mxu1 %v6380_v48  ;;  %v6478_v48 = vld [vmem:[#allocation7 + $0x25c] ss:$12 sps:$4 sm:$0xff]  }
 0x19d   : > { %2489 = vmatprep.subr.bf16.mxu1 %v6388_v51  ;;  %v6431_v51 = vld [vmem:[#allocation5 + $0x628] ss:$48 sps:$4 sm:$0xff]  }
 0x19e   : > { %v2144_v56 = vpop.f32.mrb[0].mxu1 }
 0x19f   : > { %v5835_v57 = vadd.f32 %v2144_v56, %v572_v52  ;;  %v2146_v58 = vpop.f32.mrb[1].mxu1  ;;  %v6439_v52 = vld [vmem:[#allocation5 + $0x68c] ss:$48 sps:$4 sm:$0xff]  }
 0x1a0   : > { %v5836_v61 = vadd.f32 %v2146_v58, %v576_v54  ;;  %v2148_v62 = vpop.f32.mrb[2].mxu1  ;;  %2490 = vmatpush1.bf16.msra.mxu1 %v6386_v53  ;;  %v6476_v53 = vld [vmem:[#allocation7 + $0x258] ss:$12 sps:$4 sm:$0xff]   ;;  %v6483_v54 = vld [vmem:[#allocation7 + $0x274] ss:$12 sps:$4 sm:$0xff]  }
 0x1a1   : > { %v2561_v63 = vmax.f32 %v5835_v57, 0.0  ;;  %v2149_v0 = vpop.f32.mrb[3].mxu1  ;;  %2491 = vmatprep.subr.bf16.mxu1 %v6394_v55  ;;  %v6437_v55 = vld [vmem:[#allocation5 + $0x688] ss:$48 sps:$4 sm:$0xff]   ;;  %v6445_v56 = vld [vmem:[#allocation5 + $0x6ec] ss:$48 sps:$4 sm:$0xff]  }
 0x1a2   : > { %v2562_v3 = vmax.f32 %v5836_v61, 0.0  ;;  %v6481_v57 = vld [vmem:[#allocation7 + $0x270] ss:$12 sps:$4 sm:$0xff]   ;;  %v6488_v58 = vld [vmem:[#allocation7 + $0x28c] ss:$12 sps:$4 sm:$0xff]  }
 0x1a3   : > { %v7217_v7 = vpack.c.bf16 %v2561_v63, %v2561_v63  ;;  %v6451_v61 = vld [vmem:[#allocation5 + $0x74c] ss:$48 sps:$4 sm:$0xff]   ;;  %v6486_v62 = vld [vmem:[#allocation7 + $0x288] ss:$12 sps:$4 sm:$0xff]   ;;  %v6493_v63 = vld [vmem:[#allocation7 + $0x2a4] ss:$12 sps:$4 sm:$0xff]  }
 0x1a4   : > { %v7215_v6 = vpack.c.bf16 %v2562_v3, %v2562_v3  ;;  %2492 = vmatpush1.bf16.msra.mxu1 %v6392_v60  ;;  %v6443_v60 = vld [vmem:[#allocation5 + $0x6e8] ss:$48 sps:$4 sm:$0xff]  }
 0x1a5   : > { %2493 = vmatprep.subr.bf16.mxu1 %v6400_v2  ;;  %v7221_v25 = vpop.f32.mrb[0].mxu0  ;;  %v6449_v0 = vld [vmem:[#allocation5 + $0x748] ss:$48 sps:$4 sm:$0xff]  }
 0x1a6   : > { %4554 = vmatprep.mubr.bf16.mxu0 %v7215_v6  ;;  %v7223_v26 = vpop.f32.mrb[1].mxu0  ;;  %v6498_v2 = vld [vmem:[#allocation7 + $0x2bc] ss:$12 sps:$4 sm:$0xff]  }
 0x1a7   : > { %4555 = vmatmul.mubr.bf16.vlgmr.msra.gmra.mrb[8].mxu0 %v7217_v7  ;;  %v2312_v28 = vpop.f32.mrb[2].mxu0  ;;  %v6455_v3 = vld [vmem:[#allocation5 + $0x7a8] ss:$48 sps:$4 sm:$0xff]  }
 0x1a8   : > { %2494 = vmatpush1.bf16.msra.mxu1 %v6398_v4  ;;  %4564 = vmatpush1.bf16.msra.mxu0 %v6422_v5  ;;  %v2313_v32 = vpop.f32.mrb[3].mxu0  ;;  %v6463_v4 = vld [vmem:[#allocation5 + $0x80c] ss:$48 sps:$4 sm:$0xff]   ;;  %v6496_v5 = vld [vmem:[#allocation7 + $0x2b8] ss:$12 sps:$4 sm:$0xff]  }
 0x1a9   : > { %2495 = vmatprep.subr.bf16.mxu1 %v6403_v8  ;;  %4565 = vmatprep.subr.bf16.mxu0 %v6430_v9  ;;  %v6461_v8 = vld [vmem:[#allocation5 + $0x808] ss:$48 sps:$4 sm:$0xff]   ;;  %v6503_v9 = vld [vmem:[#allocation7 + $0x2d4] ss:$12 sps:$4 sm:$0xff]   ;;  %v6495_v28 = vld [vmem:[#allocation7 + $0x50] ss:$12 sps:$4 sm:$0xff]  }
 0x1aa   : > { %v7231_v32 = vsub.s32 2, %v7198_v45 }
 0x1ac   : > { %2496 = vmatpush1.bf16.msra.mxu1 %v6401_v10  ;;  %4566 = vmatpush1.bf16.msra.mxu0 %v6428_v11  ;;  %v6469_v10 = vld [vmem:[#allocation5 + $0x86c] ss:$48 sps:$4 sm:$0xff]  }
 0x1ad   : > { %2497 = vmatprep.subr.bf16.mxu1 %v6406_v12  ;;  %4567 = vmatprep.subr.bf16.mxu0 %v6436_v13  ;;  %v6501_v11 = vld [vmem:[#allocation7 + $0x2d0] ss:$12 sps:$4 sm:$0xff]   ;;  %v6467_v12 = vld [vmem:[#allocation5 + $0x868] ss:$48 sps:$4 sm:$0xff]  }
 0x1ae   : > { %v6508_v13 = vld [vmem:[#allocation7 + $0x2ec] ss:$12 sps:$4 sm:$0xff]  }
 0x1b0   : > { %2498 = vmatpush1.bf16.msra.mxu1 %v6404_v14  ;;  %4568 = vmatpush1.bf16.msra.mxu0 %v6434_v15  ;;  %v6475_v14 = vld [vmem:[#allocation5 + $0x8cc] ss:$48 sps:$4 sm:$0xff]   ;;  %v6506_v15 = vld [vmem:[#allocation7 + $0x2e8] ss:$12 sps:$4 sm:$0xff]  }
 0x1b1   : > { %2499 = vmatprep.subr.bf16.mxu1 %v6409_v16  ;;  %4569 = vmatprep.subr.bf16.mxu0 %v6442_v17  ;;  %v6513_v16 = vld [vmem:[#allocation7 + $0x304] ss:$12 sps:$4 sm:$0xff]   ;;  %v6473_v17 = vld [vmem:[#allocation5 + $0x8c8] ss:$48 sps:$4 sm:$0xff]  }
 0x1b4   : > { %2500 = vmatpush1.bf16.msra.mxu1 %v6407_v18  ;;  %4570 = vmatpush1.bf16.msra.mxu0 %v6440_v19  ;;  %v6479_v18 = vld [vmem:[#allocation7 + $0xc8] ss:$12 sps:$4 sm:$0xff]  }
 0x1b5   : > { %2501 = vmatprep.subr.bf16.mxu1 %v6412_v20  ;;  %4571 = vmatprep.subr.bf16.mxu0 %v6448_v22  ;;  %v6480_v19 = vld [vmem:[#allocation7 + $0x8] ss:$12 sps:$4 sm:$0xff]   ;;  %v6484_v20 = vld [vmem:[#allocation7 + $0xe0] ss:$12 sps:$4 sm:$0xff]  }
 0x1b6   : > { %v6485_v22 = vld [vmem:[#allocation7 + $0x20] ss:$12 sps:$4 sm:$0xff]  }
 0x1b8   : > { %2502 = vmatpush1.bf16.msra.mxu1 %v6410_v23  ;;  %4572 = vmatpush1.bf16.msra.mxu0 %v6446_v24  ;;  %v6489_v23 = vld [vmem:[#allocation7 + $0xf8] ss:$12 sps:$4 sm:$0xff]  }
 0x1b9   : > { %2503 = vmatprep.subr.bf16.mxu1 %v6415_v27  ;;  %4573 = vmatprep.subr.bf16.mxu0 %v6454_v29  ;;  %v6490_v24 = vld [vmem:[#allocation7 + $0x38] ss:$12 sps:$4 sm:$0xff]   ;;  %v6494_v27 = vld [vmem:[#allocation7 + $0x110] ss:$12 sps:$4 sm:$0xff]   ;;  %v6499_v29 = vld [vmem:[#allocation7 + $0x128] ss:$12 sps:$4 sm:$0xff]  }
 0x1bc   : > { %2504 = vmatpush1.bf16.msra.mxu1 %v6413_v30  ;;  %4574 = vmatpush1.bf16.msra.mxu0 %v6452_v33  ;;  %v591_v30 = vsub.s32 5, %v7198_v45  ;;  %v6504_v33 = vld [vmem:[#allocation7 + $0x140] ss:$12 sps:$4 sm:$0xff]  }
 0x1bd   : > { %2505 = vmatprep.subr.bf16.mxu1 %v6418_v34  ;;  %4575 = vmatprep.subr.bf16.mxu0 %v6460_v35  ;;  %v580_v35 = vrot.slane %v7203_v49, %v7231_v32 }
 0x1be   : > { %v592_v34 = vrot.slane %v7203_v49, %v591_v30  ;;  %v6553_v30 = vld [vmem:[#allocation7 + $0x3c4] ss:$12 sps:$4 sm:$0xff]  }
 0x1c0   : > { %2506 = vmatpush1.bf16.msra.mxu1 %v6416_v36  ;;  %4576 = vmatpush1.bf16.msra.mxu0 %v6458_v37  ;;  %v6505_v37 = vld [vmem:[#allocation7 + $0x80] ss:$12 sps:$4 sm:$0xff]  }
 0x1c1   : > { %2507 = vmatprep.subr.bf16.mxu1 %v6421_v38  ;;  %4577 = vmatprep.subr.bf16.mxu0 %v6466_v39  ;;  %v6509_v38 = vld [vmem:[#allocation7 + $0x158] ss:$12 sps:$4 sm:$0xff]   ;;  %v5840_v39 = vadd.f32 %v7223_v26, %v592_v34  ;;  %v6515_v26 = vld [vmem:[#allocation7 + $0xb0] ss:$12 sps:$4 sm:$0xff]  }
 0x1c2   : > { %v6555_v34 = vld [vmem:[#allocation7 + $0x230] ss:$12 sps:$4 sm:$0xff]  }
 0x1c4   : > { %2508 = vmatpush1.bf16.msra.mxu1 %v6419_v40  ;;  %4578 = vmatpush1.bf16.msra.mxu0 %v6464_v41 }
 0x1c5   : > { %2509 = vmatprep.subr.bf16.mxu1 %v6427_v42  ;;  %4579 = vmatprep.subr.bf16.mxu0 %v6472_v43 }
 0x1c8   : > { %2510 = vmatpush1.bf16.msra.mxu1 %v6425_v44  ;;  %4580 = vmatpush1.bf16.msra.mxu0 %v6470_v47 }
 0x1c9   : > { %2520 = vmatprep.subr.bf16.mxu1 %v6433_v46  ;;  %4581 = vmatprep.subr.bf16.mxu0 %v6478_v48  ;;  %v6510_v46 = vld [vmem:[#allocation7 + $0x98] ss:$12 sps:$4 sm:$0xff]  }
 0x1cb   : > { %2512 = vmatmul.mubr.bf16.vlgmr.msra.gmra.mrb[12].mxu1 %v7174_v59  ;;  %v6457_v59 = vld [vmem:[#allocation5 + $0x7ac] ss:$48 sps:$4 sm:$0xff]  }
 0x1cc   : > { %2521 = vmatpush1.bf16.msra.mxu1 %v6431_v51  ;;  %2552 = vmatprep.mubr.bf16.mxu1 %v6951_v1  ;;  %v6491_v1 = vld [vmem:[#allocation7 + $0x2a0] ss:$12 sps:$4 sm:$0xff]   ;;  %v6514_v51 = vld [vmem:[#allocation7 + $0x170] ss:$12 sps:$4 sm:$0xff]  }
 0x1cd   : > { %2522 = vmatprep.subr.bf16.mxu1 %v6439_v52  ;;  %4582 = vmatpush1.bf16.msra.mxu0 %v6476_v53  ;;  %v2566_v52 = vmax.f32 %v5840_v39, 0.0  ;;  %v6563_v39 = vld [vmem:[#allocation7 + $0x3f4] ss:$12 sps:$4 sm:$0xff]  }
 0x1ce   : > { %4583 = vmatprep.subr.bf16.mxu0 %v6483_v54 }
 0x1d0   : > { %2523 = vmatpush1.bf16.msra.mxu1 %v6437_v55  ;;  %v6511_v55 = vld [vmem:[#allocation7 + $0x300] ss:$12 sps:$4 sm:$0xff]  }
 0x1d1   : > { %2524 = vmatprep.subr.bf16.mxu1 %v6445_v56  ;;  %4584 = vmatpush1.bf16.msra.mxu0 %v6481_v57  ;;  %v6518_v57 = vld [vmem:[#allocation7 + $0x31c] ss:$12 sps:$4 sm:$0xff]  }
 0x1d2   : > { %4585 = vmatprep.subr.bf16.mxu0 %v6488_v58  ;;  %v7243_v58 = vpack.c.bf16 %v2566_v52, %v2566_v52  ;;  %v6571_v52 = vld [vmem:[#allocation7 + $0x420] ss:$12 sps:$4 sm:$0xff]  }
 0x1d4   : > { %2525 = vmatpush1.bf16.msra.mxu1 %v6443_v60  ;;  %v6519_v60 = vld [vmem:[#allocation7 + $0x248] ss:$12 sps:$4 sm:$0xff]  }
 0x1d5   : > { %2526 = vmatprep.subr.bf16.mxu1 %v6451_v61  ;;  %4586 = vmatpush1.bf16.msra.mxu0 %v6486_v62  ;;  %v6516_v61 = vld [vmem:[#allocation7 + $0x318] ss:$12 sps:$4 sm:$0xff]   ;;  %v6520_v62 = vld [vmem:[#allocation7 + $0x188] ss:$12 sps:$4 sm:$0xff]  }
 0x1d6   : > { %4587 = vmatprep.subr.bf16.mxu0 %v6493_v63  ;;  %v6523_v63 = vld [vmem:[#allocation7 + $0x334] ss:$12 sps:$4 sm:$0xff]  }
 0x1d8   : > { %2527 = vmatpush1.bf16.msra.mxu1 %v6449_v0  ;;  %v6524_v0 = vld [vmem:[#allocation7 + $0x260] ss:$12 sps:$4 sm:$0xff]  }
 0x1d9   : > { %2528 = vmatprep.subr.bf16.mxu1 %v6457_v59  ;;  %4588 = vmatpush1.bf16.msra.mxu0 %v6491_v1  ;;  %v6521_v59 = vld [vmem:[#allocation7 + $0x330] ss:$12 sps:$4 sm:$0xff]   ;;  %v6525_v1 = vld [vmem:[#allocation7 + $0x1a0] ss:$12 sps:$4 sm:$0xff]  }
 0x1da   : > { %4589 = vmatprep.subr.bf16.mxu0 %v6498_v2  ;;  %v6528_v2 = vld [vmem:[#allocation7 + $0x34c] ss:$12 sps:$4 sm:$0xff]  }
 0x1dc   : > { %2529 = vmatpush1.bf16.msra.mxu1 %v6455_v3  ;;  %v6529_v3 = vld [vmem:[#allocation7 + $0x278] ss:$12 sps:$4 sm:$0xff]  }
 0x1dd   : > { %2530 = vmatprep.subr.bf16.mxu1 %v6463_v4  ;;  %4590 = vmatpush1.bf16.msra.mxu0 %v6496_v5  ;;  %v6526_v4 = vld [vmem:[#allocation7 + $0x348] ss:$12 sps:$4 sm:$0xff]   ;;  %v6530_v5 = vld [vmem:[#allocation7 + $0x1b8] ss:$12 sps:$4 sm:$0xff]  }
 0x1de   : > { %4591 = vmatprep.subr.bf16.mxu0 %v6503_v9  ;;  %v6534_v9 = vld [vmem:[#allocation7 + $0x290] ss:$12 sps:$4 sm:$0xff]  }
 0x1e0   : > { %2531 = vmatpush1.bf16.msra.mxu1 %v6461_v8  ;;  %v6533_v8 = vld [vmem:[#allocation7 + $0x364] ss:$12 sps:$4 sm:$0xff]  }
 0x1e1   : > { %2532 = vmatprep.subr.bf16.mxu1 %v6469_v10  ;;  %4592 = vmatpush1.bf16.msra.mxu0 %v6501_v11 }
 0x1e2   : > { %4593 = vmatprep.subr.bf16.mxu0 %v6508_v13  ;;  %v6538_v13 = vld [vmem:[#allocation7 + $0x37c] ss:$12 sps:$4 sm:$0xff]  }
 0x1e4   : > { %2533 = vmatpush1.bf16.msra.mxu1 %v6467_v12  ;;  %v6535_v12 = vld [vmem:[#allocation7 + $0x1d0] ss:$12 sps:$4 sm:$0xff]  }
 0x1e5   : > { %2534 = vmatprep.subr.bf16.mxu1 %v6475_v14  ;;  %4594 = vmatpush1.bf16.msra.mxu0 %v6506_v15  ;;  %v6539_v15 = vld [vmem:[#allocation7 + $0x2a8] ss:$12 sps:$4 sm:$0xff]  }
 0x1e6   : > { %4604 = vmatprep.subr.bf16.mxu0 %v6513_v16 }
 0x1e8   : > { %2535 = vmatpush1.bf16.msra.mxu1 %v6473_v17  ;;  %v6536_v17 = vld [vmem:[#allocation7 + $0x378] ss:$12 sps:$4 sm:$0xff]  }
 0x1e9   : > { %5703 = vmatprep.subr.bf16.mxu1 %v6479_v18  ;;  %v6540_v18 = vld [vmem:[#allocation7 + $0x1e8] ss:$12 sps:$4 sm:$0xff]  }
 0x1eb   : > { %2553 = vmatmul.mubr.bf16.vlgmr.msra.gmra.mrb[12].mxu1 %v7181_v31  ;;  %v6500_v31 = vld [vmem:[#allocation7 + $0x68] ss:$12 sps:$4 sm:$0xff]  }
 0x1ec   : > { %5704 = vmatpush3.bf16.msra.mxu1 %v6480_v19  ;;  %4800 = vmatprep.mubr.bf16.mxu1 %v7215_v6  ;;  %v583_v6 = vsub.s32 3, %v7198_v45  ;;  %v6543_v19 = vld [vmem:[#allocation7 + $0x394] ss:$12 sps:$4 sm:$0xff]  }
 0x1ed   : > { %5705 = vmatprep.subr.bf16.mxu1 %v6484_v20  ;;  %v6544_v20 = vld [vmem:[#allocation7 + $0x2c0] ss:$12 sps:$4 sm:$0xff]  }
 0x1ee   : > { %v584_v36 = vrot.slane %v7203_v49, %v583_v6 }
 0x1f0   : > { %5706 = vmatpush3.bf16.msra.mxu1 %v6485_v22  ;;  %v6541_v22 = vld [vmem:[#allocation7 + $0x390] ss:$12 sps:$4 sm:$0xff]  }
 0x1f1   : > { %5707 = vmatprep.subr.bf16.mxu1 %v6489_v23  ;;  %v6545_v23 = vld [vmem:[#allocation7 + $0x200] ss:$12 sps:$4 sm:$0xff]  }
 0x1f4   : > { %5708 = vmatpush3.bf16.msra.mxu1 %v6490_v24  ;;  %v6548_v24 = vld [vmem:[#allocation7 + $0x3ac] ss:$12 sps:$4 sm:$0xff]  }
 0x1f5   : > { %5709 = vmatprep.subr.bf16.mxu1 %v6494_v27  ;;  %v6549_v27 = vld [vmem:[#allocation7 + $0x2d8] ss:$12 sps:$4 sm:$0xff]  }
 0x1f8   : > { %5710 = vmatpush3.bf16.msra.mxu1 %v6495_v28  ;;  %v6546_v28 = vld [vmem:[#allocation7 + $0x3a8] ss:$12 sps:$4 sm:$0xff]  }
 0x1f9   : > { %5711 = vmatprep.subr.bf16.mxu1 %v6499_v29  ;;  %v6550_v29 = vld [vmem:[#allocation7 + $0x218] ss:$12 sps:$4 sm:$0xff]  }
 0x1fc   : > { %5712 = vmatpush3.bf16.msra.mxu1 %v6500_v31  ;;  %v6554_v31 = vld [vmem:[#allocation7 + $0x2f0] ss:$12 sps:$4 sm:$0xff]  }
 0x1fd   : > { %5713 = vmatprep.subr.bf16.mxu1 %v6504_v33  ;;  %v6551_v33 = vld [vmem:[#allocation7 + $0x3c0] ss:$12 sps:$4 sm:$0xff]  }
 0x1fe   : > { %v2226_v40 = vpop.f32.mrb[4].mxu1 }
 0x1ff   : > { %v5837_v41 = vadd.f32 %v2226_v40, %v580_v35  ;;  %v2228_v42 = vpop.f32.mrb[5].mxu1  ;;  %v6558_v35 = vld [vmem:[#allocation7 + $0x3dc] ss:$12 sps:$4 sm:$0xff]   ;;  %v6564_v40 = vld [vmem:[#allocation7 + $0x3e0] ss:$12 sps:$4 sm:$0xff]  }
 0x200   : > { %v5838_v43 = vadd.f32 %v2228_v42, %v584_v36  ;;  %v2230_v44 = vpop.f32.mrb[6].mxu1  ;;  %5714 = vmatpush3.bf16.msra.mxu1 %v6505_v37  ;;  %v6559_v36 = vld [vmem:[#allocation7 + $0x3c8] ss:$12 sps:$4 sm:$0xff]   ;;  %v6556_v37 = vld [vmem:[#allocation7 + $0x3d8] ss:$12 sps:$4 sm:$0xff]  }
 0x201   : > { %v2563_v47 = vmax.f32 %v5837_v41, 0.0  ;;  %v2231_v48 = vpop.f32.mrb[7].mxu1  ;;  %5715 = vmatprep.subr.bf16.mxu1 %v6509_v38  ;;  %v6560_v38 = vld [vmem:[#allocation7 + $0x308] ss:$12 sps:$4 sm:$0xff]   ;;  %v6561_v41 = vld [vmem:[#allocation7 + $0x3f0] ss:$12 sps:$4 sm:$0xff]  }
 0x202   : > { %v2564_v53 = vmax.f32 %v5838_v43, 0.0  ;;  %v6565_v42 = vld [vmem:[#allocation7 + $0x320] ss:$12 sps:$4 sm:$0xff]   ;;  %v6569_v44 = vld [vmem:[#allocation7 + $0x3f8] ss:$12 sps:$4 sm:$0xff]  }
 0x203   : > { %v7241_v56 = vpack.c.bf16 %v2563_v47, %v2563_v47  ;;  %v6568_v43 = vld [vmem:[#allocation7 + $0x40c] ss:$12 sps:$4 sm:$0xff]   ;;  %v6573_v48 = vld [vmem:[#allocation7 + $0x424] ss:$12 sps:$4 sm:$0xff]  }
 0x204   : > { %v2576_v54 = vpack.c.bf16 %v2564_v53, %v2564_v53  ;;  %5716 = vmatpush3.bf16.msra.mxu1 %v6510_v46  ;;  %v6566_v46 = vld [vmem:[#allocation7 + $0x408] ss:$12 sps:$4 sm:$0xff]   ;;  %v6570_v47 = vld [vmem:[#allocation7 + $0x338] ss:$12 sps:$4 sm:$0xff]   ;;  %v587_v53 = vsub.s32 4, %v7198_v45 }
 0x205   : > { %5717 = vmatprep.subr.bf16.mxu1 %v6514_v51  ;;  %v7248_v10 = vpop.f32.mrb[4].mxu0  ;;  %v6574_v51 = vld [vmem:[#allocation7 + $0x410] ss:$12 sps:$4 sm:$0xff]  }
 0x206   : > { %4595 = vmatprep.mubr.bf16.mxu0 %v2576_v54  ;;  %v7250_v11 = vpop.f32.mrb[5].mxu0 }
 0x207   : > { %4596 = vmatmul.mubr.bf16.vlgmr.msra.gmra.mrb[8].mxu0 %v7241_v56  ;;  %v2476_v14 = vpop.f32.mrb[6].mxu0 }
 0x208   : > { %4605 = vmatpush1.bf16.msra.mxu0 %v6511_v55  ;;  %4636 = vmatprep.mubr.bf16.mxu0 %v7243_v58  ;;  %v2477_v16 = vpop.f32.mrb[7].mxu0  ;;  %v6578_v55 = vld [vmem:[#allocation7 + $0x43c] ss:$12 sps:$4 sm:$0xff]  }
 0x209   : > { %5718 = vmatpush3.bf16.msra.mxu1 %v6515_v26  ;;  %4606 = vmatprep.subr.bf16.mxu0 %v6518_v57  ;;  %v6576_v26 = vld [vmem:[#allocation7 + $0x438] ss:$12 sps:$4 sm:$0xff]   ;;  %v588_v57 = vrot.slane %v7203_v49, %v587_v53  ;;  %v6600_v14 = vld [vmem:[#allocation7 + $0x488] ss:$12 sps:$4 sm:$0xff]   ;;  %v6604_v16 = vld [vmem:[#allocation7 + $0x560] ss:$12 sps:$4 sm:$0xff]  }
 0x20a   : > { %5725 = vmatprep.subr.bf16.mxu1 %v6519_v60  ;;  %v6583_v60 = vld [vmem:[#allocation7 + $0x454] ss:$12 sps:$4 sm:$0xff]   ;;  %v6590_v49 = vld [vmem:[#allocation7 + $0x398] ss:$12 sps:$4 sm:$0xff]  }
 0x20c   : > { %4607 = vmatpush1.bf16.msra.mxu0 %v6516_v61  ;;  %4801 = vmatmul.mubr.bf16.vlgmr.msra.gmra.mrb[16].mxu1 %v7217_v7  ;;  %v6531_v7 = vld [vmem:[#allocation7 + $0x360] ss:$12 sps:$4 sm:$0xff]  }
 0x20d   : > { %5726 = vmatpush3.bf16.msra.mxu1 %v6520_v62  ;;  %4840 = vmatprep.mubr.bf16.mxu1 %v2576_v54  ;;  %v6575_v54 = vld [vmem:[#allocation7 + $0x350] ss:$12 sps:$4 sm:$0xff]   ;;  %v6584_v61 = vld [vmem:[#allocation7 + $0x440] ss:$12 sps:$4 sm:$0xff]  }
 0x20e   : > { %4608 = vmatprep.subr.bf16.mxu0 %v6523_v63  ;;  %5727 = vmatprep.subr.bf16.mxu1 %v6524_v0  ;;  %v6581_v62 = vld [vmem:[#allocation7 + $0x450] ss:$12 sps:$4 sm:$0xff]   ;;  %v5839_v63 = vadd.f32 %v7221_v25, %v588_v57  ;;  %v6585_v0 = vld [vmem:[#allocation7 + $0x380] ss:$12 sps:$4 sm:$0xff]  }
 0x20f   : > { %v6595_v25 = vld [vmem:[#allocation7 + $0x3b0] ss:$12 sps:$4 sm:$0xff]  }
 0x210   : > { %4609 = vmatpush1.bf16.msra.mxu0 %v6521_v59  ;;  %v6588_v59 = vld [vmem:[#allocation7 + $0x46c] ss:$12 sps:$4 sm:$0xff]   ;;  %v6633_v57 = vld [vmem:[#allocation7 + $0x544] ss:$12 sps:$4 sm:$0xff]  }
 0x211   : > { %5728 = vmatpush3.bf16.msra.mxu1 %v6525_v1  ;;  %4610 = vmatprep.subr.bf16.mxu0 %v6528_v2  ;;  %v6589_v1 = vld [vmem:[#allocation7 + $0x458] ss:$12 sps:$4 sm:$0xff]   ;;  %v6586_v2 = vld [vmem:[#allocation7 + $0x468] ss:$12 sps:$4 sm:$0xff]  }
 0x212   : > { %5729 = vmatprep.subr.bf16.mxu1 %v6529_v3  ;;  %v2565_v3 = vmax.f32 %v5839_v63, 0.0 }
 0x214   : > { %4611 = vmatpush1.bf16.msra.mxu0 %v6526_v4  ;;  %v6593_v4 = vld [vmem:[#allocation7 + $0x484] ss:$12 sps:$4 sm:$0xff]  }
 0x215   : > { %5730 = vmatpush3.bf16.msra.mxu1 %v6530_v5  ;;  %4612 = vmatprep.subr.bf16.mxu0 %v6533_v8  ;;  %v6594_v5 = vld [vmem:[#allocation7 + $0x470] ss:$12 sps:$4 sm:$0xff]   ;;  %v6591_v8 = vld [vmem:[#allocation7 + $0x480] ss:$12 sps:$4 sm:$0xff]  }
 0x216   : > { %5731 = vmatprep.subr.bf16.mxu1 %v6534_v9  ;;  %v2577_v9 = vpack.c.bf16 %v2565_v3, %v2565_v3  ;;  %v6639_v3 = vld [vmem:[#allocation7 + $0x6c8] ss:$12 sps:$4 sm:$0xff]  }
 0x218   : > { %4613 = vmatpush1.bf16.msra.mxu0 %v6531_v7  ;;  %v6598_v7 = vld [vmem:[#allocation7 + $0x49c] ss:$12 sps:$4 sm:$0xff]  }
 0x219   : > { %5732 = vmatpush3.bf16.msra.mxu1 %v6535_v12  ;;  %4614 = vmatprep.subr.bf16.mxu0 %v6538_v13  ;;  %v6599_v12 = vld [vmem:[#allocation7 + $0x548] ss:$12 sps:$4 sm:$0xff]   ;;  %v6596_v13 = vld [vmem:[#allocation7 + $0x498] ss:$12 sps:$4 sm:$0xff]  }
 0x21a   : > { %5733 = vmatprep.subr.bf16.mxu1 %v6539_v15  ;;  %v6603_v15 = vld [vmem:[#allocation7 + $0x4b4] ss:$12 sps:$4 sm:$0xff]  }
 0x21c   : > { %4615 = vmatpush1.bf16.msra.mxu0 %v6536_v17  ;;  %v6601_v17 = vld [vmem:[#allocation7 + $0x4b0] ss:$12 sps:$4 sm:$0xff]  }
 0x21d   : > { %5734 = vmatpush3.bf16.msra.mxu1 %v6540_v18  ;;  %4616 = vmatprep.subr.bf16.mxu0 %v6543_v19  ;;  %v6605_v18 = vld [vmem:[#allocation7 + $0x4a0] ss:$12 sps:$4 sm:$0xff]  }
 0x21e   : > { %5735 = vmatprep.subr.bf16.mxu1 %v6544_v20  ;;  %v6608_v19 = vld [vmem:[#allocation7 + $0x4cc] ss:$12 sps:$4 sm:$0xff]  }
 0x21f   : > { %v6609_v20 = vld [vmem:[#allocation7 + $0x578] ss:$12 sps:$4 sm:$0xff]  }
 0x220   : > { %4617 = vmatpush1.bf16.msra.mxu0 %v6541_v22  ;;  %v6606_v22 = vld [vmem:[#allocation7 + $0x4c8] ss:$12 sps:$4 sm:$0xff]  }
 0x221   : > { %5736 = vmatpush3.bf16.msra.mxu1 %v6545_v23  ;;  %4618 = vmatprep.subr.bf16.mxu0 %v6548_v24  ;;  %v6610_v23 = vld [vmem:[#allocation7 + $0x4b8] ss:$12 sps:$4 sm:$0xff]  }
 0x222   : > { %5737 = vmatprep.subr.bf16.mxu1 %v6549_v27  ;;  %v6613_v24 = vld [vmem:[#allocation7 + $0x4e4] ss:$12 sps:$4 sm:$0xff]  }
 0x223   : > { %v6614_v27 = vld [vmem:[#allocation7 + $0x590] ss:$12 sps:$4 sm:$0xff]  }
 0x224   : > { %4619 = vmatpush1.bf16.msra.mxu0 %v6546_v28  ;;  %v6611_v28 = vld [vmem:[#allocation7 + $0x4e0] ss:$12 sps:$4 sm:$0xff]  }
 0x225   : > { %5738 = vmatpush3.bf16.msra.mxu1 %v6550_v29  ;;  %4620 = vmatprep.subr.bf16.mxu0 %v6553_v30  ;;  %v6615_v29 = vld [vmem:[#allocation7 + $0x4d0] ss:$12 sps:$4 sm:$0xff]  }
 0x226   : > { %5739 = vmatprep.subr.bf16.mxu1 %v6554_v31  ;;  %v6618_v30 = vld [vmem:[#allocation7 + $0x4fc] ss:$12 sps:$4 sm:$0xff]  }
 0x227   : > { %v6619_v31 = vld [vmem:[#allocation7 + $0x5a8] ss:$12 sps:$4 sm:$0xff]  }
 0x228   : > { %4621 = vmatpush1.bf16.msra.mxu0 %v6551_v33  ;;  %v6616_v33 = vld [vmem:[#allocation7 + $0x4f8] ss:$12 sps:$4 sm:$0xff]  }
 0x229   : > { %5740 = vmatpush3.bf16.msra.mxu1 %v6555_v34  ;;  %4622 = vmatprep.subr.bf16.mxu0 %v6558_v35  ;;  %v599_v34 = vsub.s32 7, %v7198_v45  ;;  %v6620_v35 = vld [vmem:[#allocation7 + $0x4e8] ss:$12 sps:$4 sm:$0xff]  }
 0x22a   : > { %5747 = vmatprep.subr.bf16.mxu1 %v6559_v36  ;;  %v6623_v36 = vld [vmem:[#allocation7 + $0x514] ss:$12 sps:$4 sm:$0xff]  }
 0x22c   : > { %4623 = vmatpush1.bf16.msra.mxu0 %v6556_v37  ;;  %4841 = vmatmul.mubr.bf16.vlgmr.msra.gmra.mrb[20].mxu1 %v7241_v56  ;;  %v6579_v56 = vld [vmem:[#allocation7 + $0x428] ss:$12 sps:$4 sm:$0xff]   ;;  %v595_v37 = vsub.s32 6, %v7198_v45  ;;  %v6737_v45 = vld [vmem:[#allocation7 + $0x780] ss:$12 sps:$4 sm:$0xff]  }
 0x22d   : > { %5748 = vmatpush3.bf16.msra.mxu1 %v6560_v38  ;;  %4880 = vmatprep.mubr.bf16.mxu1 %v7243_v58  ;;  %v6580_v58 = vld [vmem:[#allocation7 + $0x368] ss:$12 sps:$4 sm:$0xff]   ;;  %v6624_v38 = vld [vmem:[#allocation7 + $0x5c0] ss:$12 sps:$4 sm:$0xff]  }
 0x22e   : > { %4624 = vmatprep.subr.bf16.mxu0 %v6563_v39  ;;  %5749 = vmatprep.subr.bf16.mxu1 %v6564_v40  ;;  %v7262_v39 = vld [vmem:[%s7352_s2 + $0x8] sm:$0xf]  ;;  %v6621_v40 = vld [vmem:[#allocation7 + $0x510] ss:$12 sps:$4 sm:$0xff]  }
 0x230   : > { %4625 = vmatpush1.bf16.msra.mxu0 %v6561_v41  ;;  %v6785_v41 = vld [vmem:[%s7352_s2] sm:$0xff] }
 0x231   : > { %5750 = vmatpush3.bf16.msra.mxu1 %v6565_v42  ;;  %4626 = vmatprep.subr.bf16.mxu0 %v6568_v43  ;;  %v600_v42 = vrot.slane %v6785_v41, %v599_v34  ;;  %v6625_v43 = vld [vmem:[#allocation7 + $0x500] ss:$12 sps:$4 sm:$0xff]   ;;  %v604_v34 = vrot.slane %v7262_v39, %v7206_v21 }
 0x232   : > { %5751 = vmatprep.subr.bf16.mxu1 %v6569_v44  ;;  %v6628_v44 = vld [vmem:[#allocation7 + $0x52c] ss:$12 sps:$4 sm:$0xff]  }
 0x234   : > { %4627 = vmatpush1.bf16.msra.mxu0 %v6566_v46  ;;  %v596_v46 = vrot.slane %v6785_v41, %v595_v37  ;;  %v6670_v37 = vld [vmem:[#allocation7 + $0x698] ss:$12 sps:$4 sm:$0xff]   ;;  %v6674_v41 = vld [vmem:[#allocation7 + $0x770] ss:$12 sps:$4 sm:$0xff]  }
 0x235   : > { %5752 = vmatpush3.bf16.msra.mxu1 %v6570_v47  ;;  %4628 = vmatprep.subr.bf16.mxu0 %v6573_v48  ;;  %v6629_v48 = vld [vmem:[#allocation7 + $0x5d8] ss:$12 sps:$4 sm:$0xff]  }
 0x236   : > { %5753 = vmatprep.subr.bf16.mxu1 %v6574_v51  ;;  %v608_v51 = vrot.slane %v7262_v39, %v7209_v50 }
 0x238   : > { %4629 = vmatpush1.bf16.msra.mxu0 %v6571_v52 }
 0x239   : > { %5754 = vmatpush3.bf16.msra.mxu1 %v6575_v54  ;;  %4630 = vmatprep.subr.bf16.mxu0 %v6578_v55  ;;  %v6626_v55 = vld [vmem:[#allocation7 + $0x528] ss:$12 sps:$4 sm:$0xff]  }
 0x23a   : > { %5755 = vmatprep.subr.bf16.mxu1 %v6579_v56 }
 0x23c   : > { %4631 = vmatpush1.bf16.msra.mxu0 %v6576_v26  ;;  %v6630_v26 = vld [vmem:[#allocation7 + $0x518] ss:$12 sps:$4 sm:$0xff]  }
 0x23d   : > { %5756 = vmatpush3.bf16.msra.mxu1 %v6580_v58  ;;  %4632 = vmatprep.subr.bf16.mxu0 %v6583_v60 }
 0x23e   : > { %5757 = vmatprep.subr.bf16.mxu1 %v6584_v61  ;;  %v5844_v61 = vadd.f32 %v7250_v11, %v608_v51  ;;  %v6701_v51 = vld [vmem:[#allocation7 + $0x788] ss:$12 sps:$4 sm:$0xff]  }
 0x240   : > { %4633 = vmatpush1.bf16.msra.mxu0 %v6581_v62  ;;  %v6634_v62 = vld [vmem:[#allocation7 + $0x5f0] ss:$12 sps:$4 sm:$0xff]  }
 0x241   : > { %5758 = vmatpush3.bf16.msra.mxu1 %v6585_v0  ;;  %4634 = vmatprep.subr.bf16.mxu0 %v6588_v59  ;;  %v6631_v0 = vld [vmem:[#allocation7 + $0x540] ss:$12 sps:$4 sm:$0xff]   ;;  %v6635_v59 = vld [vmem:[#allocation7 + $0x530] ss:$12 sps:$4 sm:$0xff]  }
 0x242   : > { %5759 = vmatprep.subr.bf16.mxu1 %v6589_v1  ;;  %v6638_v1 = vld [vmem:[#allocation7 + $0x55c] ss:$12 sps:$4 sm:$0xff]  }
 0x244   : > { %4635 = vmatpush1.bf16.msra.mxu0 %v6586_v2 }
 0x245   : > { %5760 = vmatpush3.bf16.msra.mxu1 %v6590_v49  ;;  %4645 = vmatprep.subr.bf16.mxu0 %v6593_v4  ;;  %v2570_v49 = vmax.f32 %v5844_v61, 0.0  ;;  %v6636_v4 = vld [vmem:[#allocation7 + $0x558] ss:$12 sps:$4 sm:$0xff]   ;;  %v6715_v61 = vld [vmem:[#allocation7 + $0x890] ss:$12 sps:$4 sm:$0xff]  }
 0x246   : > { %5761 = vmatprep.subr.bf16.mxu1 %v6594_v5  ;;  %v6640_v5 = vld [vmem:[#allocation7 + $0x608] ss:$12 sps:$4 sm:$0xff]  }
 0x247   : > { %4637 = vmatmul.mubr.bf16.vlgmr.msra.gmra.mrb[8].mxu0 %v2577_v9 }
 0x248   : > { %4646 = vmatpush1.bf16.msra.mxu0 %v6591_v8  ;;  %v6643_v8 = vld [vmem:[#allocation7 + $0x574] ss:$12 sps:$4 sm:$0xff]  }
 0x249   : > { %5762 = vmatpush3.bf16.msra.mxu1 %v6595_v25  ;;  %4647 = vmatprep.subr.bf16.mxu0 %v6598_v7  ;;  %v7272_v25 = vpack.c.bf16 %v2570_v49, %v2570_v49  ;;  %v6641_v7 = vld [vmem:[#allocation7 + $0x570] ss:$12 sps:$4 sm:$0xff]   ;;  %v6725_v49 = vld [vmem:[#allocation7 + $0x8c0] ss:$12 sps:$4 sm:$0xff]  }
 0x24a   : > { %5769 = vmatprep.subr.bf16.mxu1 %v6599_v12  ;;  %v6645_v12 = vld [vmem:[#allocation7 + $0x620] ss:$12 sps:$4 sm:$0xff]  }
 0x24c   : > { %4648 = vmatpush1.bf16.msra.mxu0 %v6596_v13  ;;  %4881 = vmatmul.mubr.bf16.vlgmr.msra.gmra.mrb[24].mxu1 %v2577_v9  ;;  %v6644_v9 = vld [vmem:[#allocation7 + $0x6e0] ss:$12 sps:$4 sm:$0xff]  }
 0x24d   : > { %5770 = vmatpush3.bf16.msra.mxu1 %v6600_v14  ;;  %4649 = vmatprep.subr.bf16.mxu0 %v6603_v15  ;;  %v6648_v13 = vld [vmem:[#allocation7 + $0x58c] ss:$12 sps:$4 sm:$0xff]   ;;  %v6646_v15 = vld [vmem:[#allocation7 + $0x588] ss:$12 sps:$4 sm:$0xff]  }
 0x24e   : > { %5771 = vmatprep.subr.bf16.mxu1 %v6604_v16  ;;  %v6649_v14 = vld [vmem:[#allocation7 + $0x6f8] ss:$12 sps:$4 sm:$0xff]  }
 0x24f   : > { %v6650_v16 = vld [vmem:[#allocation7 + $0x638] ss:$12 sps:$4 sm:$0xff]  }
 0x250   : > { %4650 = vmatpush1.bf16.msra.mxu0 %v6601_v17  ;;  %v6653_v17 = vld [vmem:[#allocation7 + $0x5a4] ss:$12 sps:$4 sm:$0xff]  }
 0x251   : > { %5772 = vmatpush3.bf16.msra.mxu1 %v6605_v18  ;;  %4651 = vmatprep.subr.bf16.mxu0 %v6608_v19  ;;  %v6654_v18 = vld [vmem:[#allocation7 + $0x710] ss:$12 sps:$4 sm:$0xff]   ;;  %v6651_v19 = vld [vmem:[#allocation7 + $0x5a0] ss:$12 sps:$4 sm:$0xff]  }
 0x252   : > { %5773 = vmatprep.subr.bf16.mxu1 %v6609_v20  ;;  %v6655_v20 = vld [vmem:[#allocation7 + $0x650] ss:$12 sps:$4 sm:$0xff]  }
 0x254   : > { %4652 = vmatpush1.bf16.msra.mxu0 %v6606_v22  ;;  %v6658_v22 = vld [vmem:[#allocation7 + $0x5bc] ss:$12 sps:$4 sm:$0xff]  }
 0x255   : > { %5774 = vmatpush3.bf16.msra.mxu1 %v6610_v23  ;;  %4653 = vmatprep.subr.bf16.mxu0 %v6613_v24  ;;  %v6659_v23 = vld [vmem:[#allocation7 + $0x728] ss:$12 sps:$4 sm:$0xff]   ;;  %v6656_v24 = vld [vmem:[#allocation7 + $0x5b8] ss:$12 sps:$4 sm:$0xff]  }
 0x256   : > { %5775 = vmatprep.subr.bf16.mxu1 %v6614_v27  ;;  %v6660_v27 = vld [vmem:[#allocation7 + $0x668] ss:$12 sps:$4 sm:$0xff]  }
 0x258   : > { %4654 = vmatpush1.bf16.msra.mxu0 %v6611_v28  ;;  %v6663_v28 = vld [vmem:[#allocation7 + $0x5d4] ss:$12 sps:$4 sm:$0xff]  }
 0x259   : > { %5776 = vmatpush3.bf16.msra.mxu1 %v6615_v29  ;;  %4655 = vmatprep.subr.bf16.mxu0 %v6618_v30  ;;  %v6664_v29 = vld [vmem:[#allocation7 + $0x740] ss:$12 sps:$4 sm:$0xff]   ;;  %v6661_v30 = vld [vmem:[#allocation7 + $0x5d0] ss:$12 sps:$4 sm:$0xff]  }
 0x25a   : > { %5777 = vmatprep.subr.bf16.mxu1 %v6619_v31  ;;  %v6665_v31 = vld [vmem:[#allocation7 + $0x680] ss:$12 sps:$4 sm:$0xff]  }
 0x25c   : > { %4656 = vmatpush1.bf16.msra.mxu0 %v6616_v33  ;;  %v6668_v33 = vld [vmem:[#allocation7 + $0x5ec] ss:$12 sps:$4 sm:$0xff]  }
 0x25d   : > { %5778 = vmatpush3.bf16.msra.mxu1 %v6620_v35  ;;  %4657 = vmatprep.subr.bf16.mxu0 %v6623_v36  ;;  %v6669_v35 = vld [vmem:[#allocation7 + $0x758] ss:$12 sps:$4 sm:$0xff]   ;;  %v6666_v36 = vld [vmem:[#allocation7 + $0x5e8] ss:$12 sps:$4 sm:$0xff]  }
 0x25e   : > { %v2390_v47 = vpop.f32.mrb[8].mxu1  ;;  %5779 = vmatprep.subr.bf16.mxu1 %v6624_v38  ;;  %v6673_v38 = vld [vmem:[#allocation7 + $0x604] ss:$12 sps:$4 sm:$0xff]  }
 0x25f   : > { %v2392_v52 = vpop.f32.mrb[9].mxu1  ;;  %v5841_v58 = vadd.f32 %v2390_v47, %v596_v46  ;;  %v6700_v47 = vld [vmem:[#allocation7 + $0x848] ss:$12 sps:$4 sm:$0xff]  }
 0x260   : > { %v5842_v53 = vadd.f32 %v2392_v52, %v600_v42  ;;  %4658 = vmatpush1.bf16.msra.mxu0 %v6621_v40  ;;  %v2394_v54 = vpop.f32.mrb[10].mxu1  ;;  %v5843_v40 = vadd.f32 %v7248_v10, %v604_v34  ;;  %v6671_v42 = vld [vmem:[#allocation7 + $0x600] ss:$12 sps:$4 sm:$0xff]  }
 0x261   : > { %5780 = vmatpush3.bf16.msra.mxu1 %v6625_v43  ;;  %v2395_v56 = vpop.f32.mrb[11].mxu1  ;;  %4659 = vmatprep.subr.bf16.mxu0 %v6628_v44  ;;  %v2567_v2 = vmax.f32 %v5841_v58, 0.0  ;;  %v6675_v43 = vld [vmem:[#allocation7 + $0x6b0] ss:$12 sps:$4 sm:$0xff]   ;;  %v6681_v10 = vld [vmem:[#allocation7 + $0x634] ss:$12 sps:$4 sm:$0xff]  }
 0x262   : > { %v2568_v60 = vmax.f32 %v5842_v53, 0.0  ;;  %5781 = vmatprep.subr.bf16.mxu1 %v6629_v48  ;;  %v6678_v44 = vld [vmem:[#allocation7 + $0x61c] ss:$12 sps:$4 sm:$0xff]   ;;  %v2569_v46 = vmax.f32 %v5843_v40, 0.0  ;;  %v6676_v48 = vld [vmem:[#allocation7 + $0x618] ss:$12 sps:$4 sm:$0xff]  }
 0x263   : > { %v7270_v11 = vpack.c.bf16 %v2567_v2, %v2567_v2  ;;  %v6705_v53 = vld [vmem:[#allocation7 + $0x860] ss:$12 sps:$4 sm:$0xff]   ;;  %v6679_v54 = vld [vmem:[#allocation7 + $0x630] ss:$12 sps:$4 sm:$0xff]  }
 0x264   : > { %v2580_v63 = vpack.c.bf16 %v2568_v60, %v2568_v60  ;;  %4660 = vmatpush1.bf16.msra.mxu0 %v6626_v55  ;;  %v7281_v52 = vpack.c.bf16 %v2569_v46, %v2569_v46  ;;  %v6684_v55 = vld [vmem:[#allocation7 + $0x64c] ss:$12 sps:$4 sm:$0xff]   ;;  %v6687_v58 = vld [vmem:[#allocation7 + $0x664] ss:$12 sps:$4 sm:$0xff]   ;;  %v6693_v2 = vld [vmem:[#allocation7 + $0x694] ss:$12 sps:$4 sm:$0xff]  }
 0x265   : > { %5782 = vmatpush3.bf16.msra.mxu1 %v6630_v26  ;;  %4661 = vmatprep.subr.bf16.mxu0 %v6633_v57  ;;  %v6706_v56 = vld [vmem:[#allocation7 + $0x7a0] ss:$12 sps:$4 sm:$0xff]   ;;  %v6710_v26 = vld [vmem:[#allocation7 + $0x878] ss:$12 sps:$4 sm:$0xff]   ;;  %v6682_v57 = vld [vmem:[#allocation7 + $0x648] ss:$12 sps:$4 sm:$0xff]  }
 0x266   : > { %4677 = vmatprep.mubr.bf16.mxu0 %v2580_v63  ;;  %4920 = vmatprep.mubr.bf16.mxu1 %v2580_v63  ;;  %v6711_v60 = vld [vmem:[#allocation7 + $0x7b8] ss:$12 sps:$4 sm:$0xff]   ;;  %v6690_v63 = vld [vmem:[#allocation7 + $0x67c] ss:$12 sps:$4 sm:$0xff]  }
 0x267   : > { %5783 = vmatprep.subr.bf16.mxu1 %v6634_v62  ;;  %v6685_v62 = vld [vmem:[#allocation7 + $0x660] ss:$12 sps:$4 sm:$0xff]  }
 0x268   : > { %4662 = vmatpush1.bf16.msra.mxu0 %v6631_v0  ;;  %v6716_v0 = vld [vmem:[#allocation7 + $0x7d0] ss:$12 sps:$4 sm:$0xff]  }
 0x269   : > { %5784 = vmatpush3.bf16.msra.mxu1 %v6635_v59  ;;  %4663 = vmatprep.subr.bf16.mxu0 %v6638_v1  ;;  %v6720_v59 = vld [vmem:[#allocation7 + $0x8a8] ss:$12 sps:$4 sm:$0xff]   ;;  %v6688_v1 = vld [vmem:[#allocation7 + $0x678] ss:$12 sps:$4 sm:$0xff]  }
 0x26a   : > { %5791 = vmatprep.subr.bf16.mxu1 %v6639_v3  ;;  %v6721_v3 = vld [vmem:[#allocation7 + $0x7e8] ss:$12 sps:$4 sm:$0xff]  }
 0x26c   : > { %4664 = vmatpush1.bf16.msra.mxu0 %v6636_v4  ;;  %4921 = vmatmul.mubr.bf16.vlgmr.msra.gmra.mrb[28].mxu1 %v7270_v11  ;;  %v6691_v4 = vld [vmem:[#allocation7 + $0x690] ss:$12 sps:$4 sm:$0xff]  }
 0x26d   : > { %5792 = vmatpush3.bf16.msra.mxu1 %v6640_v5  ;;  %4960 = vmatprep.mubr.bf16.mxu1 %v7272_v25  ;;  %v6696_v5 = vld [vmem:[#allocation7 + $0x6ac] ss:$12 sps:$4 sm:$0xff]  }
 0x26e   : > { %4665 = vmatprep.subr.bf16.mxu0 %v6643_v8  ;;  %5793 = vmatprep.subr.bf16.mxu1 %v6644_v9  ;;  %v6730_v8 = vld [vmem:[#allocation7 + $0x8d8] ss:$12 sps:$4 sm:$0xff]   ;;  %v6694_v9 = vld [vmem:[#allocation7 + $0x6a8] ss:$12 sps:$4 sm:$0xff]  }
 0x270   : > { %4666 = vmatpush1.bf16.msra.mxu0 %v6641_v7  ;;  %v6731_v7 = vld [vmem:[#allocation7 + $0x818] ss:$12 sps:$4 sm:$0xff]  }
 0x271   : > { %5794 = vmatpush3.bf16.msra.mxu1 %v6645_v12  ;;  %4667 = vmatprep.subr.bf16.mxu0 %v6648_v13  ;;  %v6735_v12 = vld [vmem:[#allocation7 + $0x8f0] ss:$12 sps:$4 sm:$0xff]   ;;  %v6697_v13 = vld [vmem:[#allocation7 + $0x6c0] ss:$12 sps:$4 sm:$0xff]  }
 0x272   : > { %5795 = vmatprep.subr.bf16.mxu1 %v6649_v14  ;;  %v6704_v14 = vld [vmem:[#allocation7 + $0x6dc] ss:$12 sps:$4 sm:$0xff]  }
 0x274   : > { %4668 = vmatpush1.bf16.msra.mxu0 %v6646_v15  ;;  %v6736_v15 = vld [vmem:[#allocation7 + $0x830] ss:$12 sps:$4 sm:$0xff]  }
 0x275   : > { %5796 = vmatpush3.bf16.msra.mxu1 %v6650_v16  ;;  %4669 = vmatprep.subr.bf16.mxu0 %v6653_v17  ;;  %v6702_v16 = vld [vmem:[#allocation7 + $0x6d8] ss:$12 sps:$4 sm:$0xff]   ;;  %v6709_v17 = vld [vmem:[#allocation7 + $0x6f4] ss:$12 sps:$4 sm:$0xff]  }
 0x276   : > { %5797 = vmatprep.subr.bf16.mxu1 %v6654_v18  ;;  %v6707_v18 = vld [vmem:[#allocation7 + $0x6f0] ss:$12 sps:$4 sm:$0xff]  }
 0x278   : > { %4670 = vmatpush1.bf16.msra.mxu0 %v6651_v19  ;;  %v6714_v19 = vld [vmem:[#allocation7 + $0x70c] ss:$12 sps:$4 sm:$0xff]  }
 0x279   : > { %5798 = vmatpush3.bf16.msra.mxu1 %v6655_v20  ;;  %4671 = vmatprep.subr.bf16.mxu0 %v6658_v22  ;;  %v6712_v20 = vld [vmem:[#allocation7 + $0x708] ss:$12 sps:$4 sm:$0xff]   ;;  %v6719_v22 = vld [vmem:[#allocation7 + $0x724] ss:$12 sps:$4 sm:$0xff]  }
 0x27a   : > { %5799 = vmatprep.subr.bf16.mxu1 %v6659_v23  ;;  %v6717_v23 = vld [vmem:[#allocation7 + $0x720] ss:$12 sps:$4 sm:$0xff]  }
 0x27c   : > { %4672 = vmatpush1.bf16.msra.mxu0 %v6656_v24  ;;  %v6724_v24 = vld [vmem:[#allocation7 + $0x73c] ss:$12 sps:$4 sm:$0xff]  }
 0x27d   : > { %5800 = vmatpush3.bf16.msra.mxu1 %v6660_v27  ;;  %4673 = vmatprep.subr.bf16.mxu0 %v6663_v28  ;;  %v6722_v27 = vld [vmem:[#allocation7 + $0x738] ss:$12 sps:$4 sm:$0xff]   ;;  %v6729_v28 = vld [vmem:[#allocation7 + $0x754] ss:$12 sps:$4 sm:$0xff]  }
 0x27e   : > { %5801 = vmatprep.subr.bf16.mxu1 %v6664_v29  ;;  %v612_v29 = vrot.slane %v7262_v39, %v7231_v32 }
 0x280   : > { %4674 = vmatpush1.bf16.msra.mxu0 %v6661_v30  ;;  %v6727_v30 = vld [vmem:[#allocation7 + $0x750] ss:$12 sps:$4 sm:$0xff]  }
 0x281   : > { %5802 = vmatpush3.bf16.msra.mxu1 %v6665_v31  ;;  %4675 = vmatprep.subr.bf16.mxu0 %v6668_v33  ;;  %v616_v31 = vrot.slane %v7262_v39, %v583_v6  ;;  %v6734_v33 = vld [vmem:[#allocation7 + $0x76c] ss:$12 sps:$4 sm:$0xff]   ;;  %v6742_v6 = vld [vmem:[#allocation7 + $0x79c] ss:$12 sps:$4 sm:$0xff]  }
 0x282   : > { %5803 = vmatprep.subr.bf16.mxu1 %v6669_v35  ;;  %v6740_v39 = vld [vmem:[#allocation7 + $0x798] ss:$12 sps:$4 sm:$0xff]  }
 0x284   : > { %4676 = vmatpush1.bf16.msra.mxu0 %v6666_v36 }
 0x285   : > { %5804 = vmatpush3.bf16.msra.mxu1 %v6670_v37  ;;  %4686 = vmatprep.subr.bf16.mxu0 %v6673_v38  ;;  %v6732_v38 = vld [vmem:[#allocation7 + $0x768] ss:$12 sps:$4 sm:$0xff]  }
 0x286   : > { %5805 = vmatprep.subr.bf16.mxu1 %v6674_v41 }
 0x287   : > { %4678 = vmatmul.mubr.bf16.vlgmr.msra.gmra.mrb[8].mxu0 %v7270_v11  ;;  %v6726_v11 = vld [vmem:[#allocation7 + $0x800] ss:$12 sps:$4 sm:$0xff]  }
 0x288   : > { %4687 = vmatpush1.bf16.msra.mxu0 %v6671_v42  ;;  %4718 = vmatprep.mubr.bf16.mxu0 %v7272_v25  ;;  %v6699_v25 = vld [vmem:[#allocation7 + $0x6c4] ss:$12 sps:$4 sm:$0xff]  }
 0x289   : > { %5806 = vmatpush3.bf16.msra.mxu1 %v6675_v43  ;;  %4688 = vmatprep.subr.bf16.mxu0 %v6678_v44  ;;  %v6739_v42 = vld [vmem:[#allocation7 + $0x784] ss:$12 sps:$4 sm:$0xff]  }
 0x28a   : > { %5813 = vmatprep.subr.bf16.mxu1 %v6700_v47 }
 0x28c   : > { %4689 = vmatpush1.bf16.msra.mxu0 %v6676_v48  ;;  %4961 = vmatmul.mubr.bf16.vlgmr.msra.gmra.mrb[32].mxu1 %v7281_v52  ;;  %v6745_v48 = vld [vmem:[#allocation7 + $0x7b4] ss:$12 sps:$4 sm:$0xff]  }
 0x28d   : > { %4690 = vmatprep.subr.bf16.mxu0 %v6681_v10  ;;  %5814 = vmatpush3.bf16.msra.mxu1 %v6701_v51  ;;  %v6743_v10 = vld [vmem:[#allocation7 + $0x7b0] ss:$12 sps:$4 sm:$0xff]   ;;  %v6748_v51 = vld [vmem:[#allocation7 + $0x7cc] ss:$12 sps:$4 sm:$0xff]  }
 0x28e   : > { %5815 = vmatprep.subr.bf16.mxu1 %v6705_v53  ;;  %v6746_v53 = vld [vmem:[#allocation7 + $0x7c8] ss:$12 sps:$4 sm:$0xff]  }
 0x290   : > { %4691 = vmatpush1.bf16.msra.mxu0 %v6679_v54  ;;  %v6751_v54 = vld [vmem:[#allocation7 + $0x7e4] ss:$12 sps:$4 sm:$0xff]  }
 0x291   : > { %4692 = vmatprep.subr.bf16.mxu0 %v6684_v55  ;;  %5816 = vmatpush3.bf16.msra.mxu1 %v6706_v56  ;;  %v6749_v55 = vld [vmem:[#allocation7 + $0x7e0] ss:$12 sps:$4 sm:$0xff]   ;;  %v6754_v56 = vld [vmem:[#allocation7 + $0x7fc] ss:$12 sps:$4 sm:$0xff]  }
 0x292   : > { %5817 = vmatprep.subr.bf16.mxu1 %v6710_v26  ;;  %v6757_v26 = vld [vmem:[#allocation7 + $0x814] ss:$12 sps:$4 sm:$0xff]  }
 0x294   : > { %4693 = vmatpush1.bf16.msra.mxu0 %v6682_v57  ;;  %v6755_v57 = vld [vmem:[#allocation7 + $0x810] ss:$12 sps:$4 sm:$0xff]  }
 0x295   : > { %4694 = vmatprep.subr.bf16.mxu0 %v6687_v58  ;;  %5818 = vmatpush3.bf16.msra.mxu1 %v6711_v60  ;;  %v6760_v58 = vld [vmem:[#allocation7 + $0x82c] ss:$12 sps:$4 sm:$0xff]  }
 0x296   : > { %5819 = vmatprep.subr.bf16.mxu1 %v6715_v61 }
 0x298   : > { %4695 = vmatpush1.bf16.msra.mxu0 %v6685_v62  ;;  %v6758_v62 = vld [vmem:[#allocation7 + $0x828] ss:$12 sps:$4 sm:$0xff]  }
 0x299   : > { %4696 = vmatprep.subr.bf16.mxu0 %v6690_v63  ;;  %5820 = vmatpush3.bf16.msra.mxu1 %v6716_v0 }
 0x29a   : > { %5821 = vmatprep.subr.bf16.mxu1 %v6720_v59  ;;  %v6763_v59 = vld [vmem:[#allocation7 + $0x844] ss:$12 sps:$4 sm:$0xff]  }
 0x29c   : > { %4697 = vmatpush1.bf16.msra.mxu0 %v6688_v1 }
 0x29d   : > { %4698 = vmatprep.subr.bf16.mxu0 %v6693_v2  ;;  %5822 = vmatpush3.bf16.msra.mxu1 %v6721_v3  ;;  %v6761_v2 = vld [vmem:[#allocation7 + $0x840] ss:$12 sps:$4 sm:$0xff]   ;;  %v6766_v3 = vld [vmem:[#allocation7 + $0x85c] ss:$12 sps:$4 sm:$0xff]  }
 0x29e   : > { %5823 = vmatprep.subr.bf16.mxu1 %v6725_v49  ;;  %v6764_v49 = vld [vmem:[#allocation7 + $0x858] ss:$12 sps:$4 sm:$0xff]  }
 0x2a0   : > { %4699 = vmatpush1.bf16.msra.mxu0 %v6691_v4  ;;  %v6769_v4 = vld [vmem:[#allocation7 + $0x874] ss:$12 sps:$4 sm:$0xff]  }
 0x2a1   : > { %4700 = vmatprep.subr.bf16.mxu0 %v6696_v5  ;;  %5824 = vmatpush3.bf16.msra.mxu1 %v6726_v11  ;;  %v6767_v5 = vld [vmem:[#allocation7 + $0x870] ss:$12 sps:$4 sm:$0xff]   ;;  %v6772_v11 = vld [vmem:[#allocation7 + $0x88c] ss:$12 sps:$4 sm:$0xff]  }
 0x2a2   : > { %5825 = vmatprep.subr.bf16.mxu1 %v6730_v8  ;;  %v6770_v8 = vld [vmem:[#allocation7 + $0x888] ss:$12 sps:$4 sm:$0xff]  }
 0x2a4   : > { %4701 = vmatpush1.bf16.msra.mxu0 %v6694_v9  ;;  %v6775_v9 = vld [vmem:[#allocation7 + $0x8a4] ss:$12 sps:$4 sm:$0xff]  }
 0x2a5   : > { %4702 = vmatprep.subr.bf16.mxu0 %v6699_v25  ;;  %5826 = vmatpush3.bf16.msra.mxu1 %v6731_v7  ;;  %v6773_v25 = vld [vmem:[#allocation7 + $0x8a0] ss:$12 sps:$4 sm:$0xff]   ;;  %v6778_v7 = vld [vmem:[#allocation7 + $0x8bc] ss:$12 sps:$4 sm:$0xff]  }
 0x2a6   : > { %5827 = vmatprep.subr.bf16.mxu1 %v6735_v12  ;;  %v6776_v12 = vld [vmem:[#allocation7 + $0x8b8] ss:$12 sps:$4 sm:$0xff]  }
 0x2a8   : > { %4703 = vmatpush1.bf16.msra.mxu0 %v6697_v13  ;;  %v6781_v13 = vld [vmem:[#allocation7 + $0x8d4] ss:$12 sps:$4 sm:$0xff]  }
 0x2a9   : > { %4704 = vmatprep.subr.bf16.mxu0 %v6704_v14  ;;  %5828 = vmatpush3.bf16.msra.mxu1 %v6736_v15  ;;  %v2969_v14 = vld [vmem:[%s7354_s4] sm:$0x7] }
 0x2aa   : > { %v6779_v15 = vld [vmem:[#allocation7 + $0x8d0] ss:$12 sps:$4 sm:$0xff]  }
 0x2ac   : > { %4705 = vmatpush1.bf16.msra.mxu0 %v6702_v16  ;;  %v2982_v16 = vrot.slane %v2969_v14, %v7231_v32 }
 0x2ad   : > { %4706 = vmatprep.subr.bf16.mxu0 %v6709_v17  ;;  %v6784_v17 = vld [vmem:[#allocation7 + $0x8ec] ss:$12 sps:$4 sm:$0xff]  }
 0x2b0   : > { %4707 = vmatpush1.bf16.msra.mxu0 %v6707_v18 }
 0x2b1   : > { %4708 = vmatprep.subr.bf16.mxu0 %v6714_v19 }
 0x2b4   : > { %4709 = vmatpush1.bf16.msra.mxu0 %v6712_v20  ;;  %v6782_v20 = vld [vmem:[#allocation7 + $0x8e8] ss:$12 sps:$4 sm:$0xff]  }
 0x2b5   : > { %4710 = vmatprep.subr.bf16.mxu0 %v6719_v22 }
 0x2b8   : > { %4711 = vmatpush1.bf16.msra.mxu0 %v6717_v23 }
 0x2b9   : > { %4712 = vmatprep.subr.bf16.mxu0 %v6724_v24 }
 0x2bc   : > { %4713 = vmatpush1.bf16.msra.mxu0 %v6722_v27 }
 0x2bd   : > { %4714 = vmatprep.subr.bf16.mxu0 %v6729_v28 }
 0x2be   : > { %v2554_v34 = vpop.f32.mrb[12].mxu1 }
 0x2bf   : > { %v5845_v35 = vadd.f32 %v2554_v34, %v612_v29  ;;  %v2556_v36 = vpop.f32.mrb[13].mxu1 }
 0x2c0   : > { %v5846_v37 = vadd.f32 %v2556_v36, %v616_v31  ;;  %4715 = vmatpush1.bf16.msra.mxu0 %v6727_v30  ;;  %v2558_v40 = vpop.f32.mrb[14].mxu1 }
 0x2c1   : > { %v2571_v41 = vmax.f32 %v5845_v35, 0.0  ;;  %4716 = vmatprep.subr.bf16.mxu0 %v6734_v33  ;;  %v2559_v43 = vpop.f32.mrb[15].mxu1 }
 0x2c2   : > { %v2572_v44 = vmax.f32 %v5846_v37, 0.0 }
 0x2c3   : > { %v7289_v46 = vpack.c.bf16 %v2571_v41, %v2571_v41 }
 0x2c4   : > { %v2584_v47 = vpack.c.bf16 %v2572_v44, %v2572_v44  ;;  %4717 = vmatpush1.bf16.msra.mxu0 %v6732_v38 }
 0x2c5   : > { %4727 = vmatprep.subr.bf16.mxu0 %v6739_v42 }
 0x2c6   : > { %5000 = vmatprep.mubr.bf16.mxu1 %v2584_v47 }
 0x2c7   : > { %4719 = vmatmul.mubr.bf16.vlgmr.msra.gmra.mrb[8].mxu0 %v7281_v52  ;;  %5001 = vmatmul.mubr.bf16.vlgmr.msra.gmra.mrb[36].mxu1 %v7289_v46  ;;  %v6752_v52 = vld [vmem:[#allocation7 + $0x7f8] ss:$12 sps:$4 sm:$0xff]  }
 0x2c8   : > { %4728 = vmatpush1.bf16.msra.mxu0 %v6737_v45  ;;  %4759 = vmatprep.mubr.bf16.mxu0 %v2584_v47 }
 0x2c9   : > { %4729 = vmatprep.subr.bf16.mxu0 %v6742_v6 }
 0x2cc   : > { %4730 = vmatpush1.bf16.msra.mxu0 %v6740_v39 }
 0x2cd   : > { %4731 = vmatprep.subr.bf16.mxu0 %v6745_v48 }
 0x2d0   : > { %4732 = vmatpush1.bf16.msra.mxu0 %v6743_v10 }
 0x2d1   : > { %4733 = vmatprep.subr.bf16.mxu0 %v6748_v51 }
 0x2d4   : > { %4734 = vmatpush1.bf16.msra.mxu0 %v6746_v53 }
 0x2d5   : > { %4735 = vmatprep.subr.bf16.mxu0 %v6751_v54  ;;  %v2974_v54 = vrot.slane %v2969_v14, %v7206_v21 }
 0x2d8   : > { %4736 = vmatpush1.bf16.msra.mxu0 %v6749_v55  ;;  %v2978_v55 = vrot.slane %v2969_v14, %v7209_v50 }
 0x2d9   : > { %4737 = vmatprep.subr.bf16.mxu0 %v6754_v56 }
 0x2dc   : > { %4738 = vmatpush1.bf16.msra.mxu0 %v6752_v52 }
 0x2dd   : > { %4739 = vmatprep.subr.bf16.mxu0 %v6757_v26 }
 0x2df   : > { %v5719_v60 = vpop.f32.mrb[16].mxu1 }
 0x2e0   : > { %4740 = vmatpush1.bf16.msra.mxu0 %v6755_v57  ;;  %v5720_v61 = vpop.f32.mrb[17].mxu1 }
 0x2e1   : > { %v5721_v63 = vadd.f32 %v5720_v61, %v5719_v60  ;;  %v5722_v0 = vpop.f32.mrb[18].mxu1  ;;  %4741 = vmatprep.subr.bf16.mxu0 %v6760_v58 }
 0x2e2   : > { %v5723_v1 = vpop.f32.mrb[19].mxu1 }
 0x2e3   : > { %v4803_v22 = vadd.f32 %v5721_v63, %v2982_v16 }
 0x2e4   : > { %4742 = vmatpush1.bf16.msra.mxu0 %v6758_v62 }
 0x2e5   : > { %4743 = vmatprep.subr.bf16.mxu0 %v6763_v59 }
 0x2e8   : > { %4744 = vmatpush1.bf16.msra.mxu0 %v6761_v2 }
 0x2e9   : > { %4745 = vmatprep.subr.bf16.mxu0 %v6766_v3 }
 0x2ec   : > { %4746 = vmatpush1.bf16.msra.mxu0 %v6764_v49 }
 0x2ed   : > { %4747 = vmatprep.subr.bf16.mxu0 %v6769_v4 }
 0x2f0   : > { %4748 = vmatpush1.bf16.msra.mxu0 %v6767_v5 }
 0x2f1   : > { %4749 = vmatprep.subr.bf16.mxu0 %v6772_v11 }
 0x2f4   : > { %4750 = vmatpush1.bf16.msra.mxu0 %v6770_v8 }
 0x2f5   : > { %4751 = vmatprep.subr.bf16.mxu0 %v6775_v9 }
 0x2f8   : > { %4752 = vmatpush1.bf16.msra.mxu0 %v6773_v25 }
 0x2f9   : > { %4753 = vmatprep.subr.bf16.mxu0 %v6778_v7 }
 0x2fc   : > { %4754 = vmatpush1.bf16.msra.mxu0 %v6776_v12 }
 0x2fd   : > { %4755 = vmatprep.subr.bf16.mxu0 %v6781_v13 }
 0x2ff   : > { %v5741_v18 = vpop.f32.mrb[20].mxu1 }
 0x300   : > { %4756 = vmatpush1.bf16.msra.mxu0 %v6779_v15  ;;  %v5742_v19 = vpop.f32.mrb[21].mxu1 }
 0x301   : > { %v5743_v23 = vadd.f32 %v5742_v19, %v5741_v18  ;;  %v5744_v24 = vpop.f32.mrb[22].mxu1  ;;  %4757 = vmatprep.subr.bf16.mxu0 %v6784_v17 }
 0x302   : > { %v5745_v27 = vpop.f32.mrb[23].mxu1 }
 0x303   : > { %v4843_v28 = vadd.f32 %v5743_v23, %v4803_v22 }
 0x304   : > { %4758 = vmatpush1.bf16.msra.mxu0 %v6782_v20 }
 0x307   : > { %4760 = vmatmul.mubr.bf16.vlgmr.msra.gmra.mrb[8].mxu0 %v7289_v46 }
 0x31f   : > { %v5763_v29 = vpop.f32.mrb[24].mxu1 }
 0x320   : > { %v5764_v30 = vpop.f32.mrb[25].mxu1 }
 0x321   : > { %v5765_v31 = vadd.f32 %v5764_v30, %v5763_v29  ;;  %v5766_v33 = vpop.f32.mrb[26].mxu1 }
 0x322   : > { %v5767_v32 = vpop.f32.mrb[27].mxu1 }
 0x323   : > { %v4883_v34 = vadd.f32 %v5765_v31, %v4843_v28 }
 0x33f   : > { %v5785_v35 = vpop.f32.mrb[28].mxu1 }
 0x340   : > { %v5786_v36 = vpop.f32.mrb[29].mxu1 }
 0x341   : > { %v5787_v37 = vadd.f32 %v5786_v36, %v5785_v35  ;;  %v5788_v38 = vpop.f32.mrb[30].mxu1 }
 0x342   : > { %v5789_v40 = vpop.f32.mrb[31].mxu1 }
 0x343   : > { %v4923_v41 = vadd.f32 %v5787_v37, %v4883_v34 }
 0x35f   : > { %v5807_v42 = vpop.f32.mrb[32].mxu1 }
 0x360   : > { %v5808_v43 = vpop.f32.mrb[33].mxu1 }
 0x361   : > { %v5809_v44 = vadd.f32 %v5808_v43, %v5807_v42  ;;  %v5810_v47 = vpop.f32.mrb[34].mxu1 }
 0x362   : > { %v5811_v45 = vpop.f32.mrb[35].mxu1 }
 0x363   : > { %v4963_v46 = vadd.f32 %v5809_v44, %v4923_v41 }
 0x39a   : > { %v5829_v6 = vpop.f32.mrb[36].mxu1 }
 0x39b   : > { %v5830_v39 = vpop.f32.mrb[37].mxu1 }
 0x39c   : > { %v5831_v48 = vadd.f32 %v5830_v39, %v5829_v6  ;;  %v5832_v10 = vpop.f32.mrb[38].mxu1 }
 0x39d   : > { %v5833_v51 = vpop.f32.mrb[39].mxu1 }
 0x39e   : > { %v5003_v53 = vadd.f32 %v5831_v48, %v4963_v46 }
 0x3a0   : > { %5010 = vst [vmem:[%s269_s29 + $0x10] sm:$0xff] %v5003_v53 }
 0x3da   : > { %v4761_v56 = vpop.f32.mrb[8].mxu0 }
 0x3db   : > { %v5847_v52 = vadd.f32 %v4761_v56, %v2974_v54  ;;  %v4763_v26 = vpop.f32.mrb[9].mxu0 }
 0x3dc   : > { %v5848_v57 = vadd.f32 %v4763_v26, %v2978_v55  ;;  %v4765_v58 = vpop.f32.mrb[10].mxu0 }
 0x3dd   : > { %5008 = vst [vmem:[%s269_s29] sm:$0xff] %v5847_v52  ;;  %v4766_v21 = vpop.f32.mrb[11].mxu0 }
 0x3de   : > { %5009 = vst [vmem:[%s269_s29 + $0x8] sm:$0xff] %v5848_v57 }
 0x3df   : > { %6885 = shalt.err (!%p6882_p2)
}
 0x3e0   : > { %s6886_s14 = scalar_lea.hbm %s7306_s23, 384  ;;  %s6890_s13 = scalar_lea.hbm %s7355_s5, 768 }
 0x3e1   : > { %p6887_p13 = scmp.ne.s32.totalorder %s7306_s23, %s6886_s14  ;;  %p6891_p4 = scmp.lt.u32.totalorder %s7306_s23, %s7355_s5 }
 0x3e2   : > { %p6892_p7 = scmp.lt.u32.totalorder %s6890_s13, %s6886_s14  ;;  %p6894_p11 = scmp.lt.u32.totalorder %s6886_s14, %s7306_s23 }
 0x3e3   : > { %p6888_p6 = pnand %p6887_p13, %p7369_p0 }
 0x3e4   : > { %p6893_p8 = por %p6892_p7, %p6891_p4 }
 0x3e5   : > { %p6889_p10 = pneg %p6888_p6 }
 0x3e6   : > { %p6895_p1 = por %p6894_p11, %p6893_p8 }
 0x3e8   : > { %p6896_p3 = pnand %p6895_p1, %p6889_p10 }
 0x3ea   : > { %6899 = shalt.err (!%p6896_p3)
}
 0x3eb   : > { %5907 = dma.vmem_to_hbm [thread:$0]  (%p7369_p0), %s7308_s10, 384, %s7306_s23, %s5012_s22  }
 0x3ec PF: > { %s5038_s29 = sand.u32 1, %s6930_s18   ;;  %p7370_p5 = scmp.ne.s32.totalorder %s7360_s25, 0 }
 0x3ed   : > { %p7371_p9 = scmp.ge.s32.totalorder %s6942_s21, 2  ;;  %s5039_s7 = scalar_lea.sflag [#allocation4], %s5038_s29 }
 0x3ef   : > { %p5921_p12 = pnand %p7371_p9, %p7370_p5 }
 0x3f1   : > { %6925 = dma.done.wait (!%p5921_p12), %s5039_s7, 384  }
 0x3f2   : > { %6927 = vsyncadd (!%p5921_p12), %s5039_s7, 4294966912  ;;  %p19_p2 = scmp.ge.s32.totalorder %s7093_s16, 4   ;;  %s7372_s18 = smov %s6934_s19 }
 0x3f3   : > { %s7373_s19 = smov %s6938_s20  ;;  %s7374_s20 = smov %s7102_s27 }
 0x3f4   : > { %s7375_s21 = smov %s7093_s16  ;;  %21 = sbr.rel (!%p19_p2) target bundleno = 6 (0x6), region = 93 }
 0x3fb   :  { %5044 = vsyncpa [#allocation3], 1 }
 0x3fc   :  { %5046 = vsyncpa [#allocation3 + $0x1], 1 }
 0x3fd   :  { %5047 = vsyncpa [#allocation6], 1 }
 0x3fe   :  { %5048 = vsyncpa [#allocation4], 1 }
 0x3ff   :  { %5050 = vsyncpa [#allocation4 + $0x1], 1 }

</bundles_post_ra>
